<compile_context>
chip_gen: v7x
topology: tpu7x:2x2x1
jax: 0.10.0
libtpu: 0.0.40
codegen_flags: <defaults>
</compile_context>

<pallas_src>
import functools
import numpy as np
import jax
import jax.numpy as jnp
from jax.experimental import pallas as pl
from jax.experimental.pallas import tpu as pltpu


# ----------------------------------------------------------------------------
# Sinusoid position table (identical math to the torch reference)
# ----------------------------------------------------------------------------
def get_sinusoid_encoding_table(n_position, d_hid, padding_idx=None):
    def cal_angle(position, hid_idx):
        return position / np.power(10000, 2 * (hid_idx // 2) / d_hid)

    def get_posi_angle_vec(position):
        return [cal_angle(position, j) for j in range(d_hid)]

    table = np.array([get_posi_angle_vec(p) for p in range(n_position)])
    table[:, 0::2] = np.sin(table[:, 0::2])
    table[:, 1::2] = np.cos(table[:, 1::2])
    if padding_idx is not None:
        table[padding_idx] = 0.0
    return jnp.asarray(table, dtype=jnp.float32)


# ----------------------------------------------------------------------------
# BlockSpec helpers (grid = (B,))
# ----------------------------------------------------------------------------
def _batched_spec(shape):
    rest = tuple(int(s) for s in shape[1:])
    nz = len(rest)
    return pl.BlockSpec((1,) + rest, lambda b, _nz=nz: (b,) + (0,) * _nz)


def _const_spec(shape):
    shape = tuple(int(s) for s in shape)
    n = len(shape)
    return pl.BlockSpec(shape, lambda b, _n=n: (0,) * _n)


# ----------------------------------------------------------------------------
# In-kernel building blocks
# ----------------------------------------------------------------------------
def _mish(x):
    return x * jnp.tanh(jax.nn.softplus(x))


def _make_shift_mats(T, max_pad):
    """S_o with S_o[t, t'] = 1 iff t' == t + o.  (S_o @ p)[t] = p[t+o] with zeros
    outside [0, T) -> 'same'-conv zero padding comes for free."""
    r = jax.lax.broadcasted_iota(jnp.int32, (T, T), 0)
    c = jax.lax.broadcasted_iota(jnp.int32, (T, T), 1)
    return {o: (c == r + o).astype(jnp.float32)
            for o in range(-max_pad, max_pad + 1) if o != 0}


def _conv1d_same(x, w_cat, b, K, shift_mats):
    """'Same' Conv1D, stride 1, odd K.  w_cat is (Din, K*Dout); tap k occupies
    columns [k*Dout, (k+1)*Dout).  One wide matmul + (K-1) shift-matrix matmuls."""
    T = x.shape[0]
    Dout = w_cat.shape[1] // K
    p = jnp.dot(x, w_cat, preferred_element_type=jnp.float32)      # (T, K*Dout)
    if K == 1:
        return p + b
    pad = (K - 1) // 2
    acc = jnp.zeros((T, Dout), jnp.float32)
    for k in range(K):                                             # static tap loop
        pk = p[:, k * Dout:(k + 1) * Dout]
        off = k - pad
        if off == 0:
            acc = acc + pk
        else:
            acc = acc + jnp.dot(shift_mats[off], pk,
                                preferred_element_type=jnp.float32)
    return acc + b


def _saln(h, gb, mask_col, D):
    """Style-Adaptive LayerNorm (torch.std => unbiased variance) + masked_fill(0)."""
    mu = jnp.mean(h, axis=-1, keepdims=True)
    var = jnp.sum((h - mu) ** 2, axis=-1, keepdims=True) / (D - 1)
    y = (h - mu) * jax.lax.rsqrt(var + 1e-6)        # eps guards degenerate rows
    beta = gb[:, :D]        # TODO(synk): split order (bias, gain) per StyleSpeech SALN
    gamma = gb[:, D:]
    return jnp.where(mask_col > 0, 0.0, gamma * y + beta)


# ----------------------------------------------------------------------------
# Fused encoder kernel (one grid step = one batch element)
# ----------------------------------------------------------------------------
def encoder_kernel(emb_ref, maskc_ref, maskr_ref, w_ref, pos_ref,
                   p1w_ref, p1b_ref, p2w_ref, p2b_ref, pfc_ref,
                   wqkv_ref, wo_ref, s0w_ref, s0b_ref,
                   f1w_ref, f1b_ref, f2w_ref, f2b_ref,
                   s1w_ref, s1b_ref, o_ref,
                   *, n_layers, n_head, d_k, kp, k1, k2):
    T, D = o_ref.shape[1], o_ref.shape[2]
    emb = emb_ref[0].astype(jnp.float32)            # (T, D)
    maskc = maskc_ref[0]                            # (T, 1)  1.0 = padded token
    maskr = maskr_ref[0]                            # (1, T)  key mask
    wvec = w_ref[0].astype(jnp.float32)             # (1, d_w) style vector

    max_pad = max((kp - 1) // 2, (k1 - 1) // 2, (k2 - 1) // 2)
    shifts = _make_shift_mats(T, max_pad) if max_pad > 0 else {}

    # ---- PhonemePreNet: Conv1D+Mish x2 -> FC -> mask -> +residual -> +pos enc ----
    h = _mish(_conv1d_same(emb, p1w_ref[...], p1b_ref[...], kp, shifts))
    h = _mish(_conv1d_same(h, p2w_ref[...], p2b_ref[...], kp, shifts))
    y = jnp.dot(h, pfc_ref[...], preferred_element_type=jnp.float32)   # FCBlock, bias=False
    y = jnp.where(maskc > 0, 0.0, y)
    x = emb + y + pos_ref[...].astype(jnp.float32)

    scale = 1.0 / float(np.sqrt(d_k))
    for l in range(n_layers):                        # static (unrolled) layer loop
        # ---- multi-head self-attention (+ residual, layer_norm=False) ----
        qkv = jnp.dot(x, wqkv_ref[l], preferred_element_type=jnp.float32)   # (T, 3D)
        wo_l = wo_ref[l]
        attn = jnp.zeros((T, D), jnp.float32)
        for hh in range(n_head):                     # static head loop
            lo = hh * d_k
            q_h = qkv[:, lo:lo + d_k]
            k_h = qkv[:, D + lo:D + lo + d_k]
            v_h = qkv[:, 2 * D + lo:2 * D + lo + d_k]
            s = jax.lax.dot_general(q_h, k_h, (((1,), (1,)), ((), ())),
                                    preferred_element_type=jnp.float32) * scale
            s = jnp.where(maskr > 0, -1e9, s)        # TODO(synk): reference uses -inf
            p = jax.nn.softmax(s, axis=-1)
            ctx = jnp.dot(p, v_h, preferred_element_type=jnp.float32)
            # accumulate through this head's rows of W_o -> no head concat needed
            attn = attn + jnp.dot(ctx, wo_l[lo:lo + d_k, :],
                                  preferred_element_type=jnp.float32)
        x = attn + x

        # ---- SALN 0 + mask ----
        gb = jnp.dot(wvec, s0w_ref[l], preferred_element_type=jnp.float32) + s0b_ref[l]
        x = _saln(x, gb, maskc, D)

        # ---- position-wise conv FFN (conv k1 -> ReLU -> conv k2, + residual) ----
        hf = jnp.maximum(_conv1d_same(x, f1w_ref[l], f1b_ref[l], k1, shifts), 0.0)
        x = _conv1d_same(hf, f2w_ref[l], f2b_ref[l], k2, shifts) + x

        # ---- SALN 1 + mask ----
        gb = jnp.dot(wvec, s1w_ref[l], preferred_element_type=jnp.float32) + s1b_ref[l]
        x = _saln(x, gb, maskc, D)

    o_ref[0] = x.astype(o_ref.dtype)


# ----------------------------------------------------------------------------
# Forward wrapper: one pallas_call for the whole encoder
# ----------------------------------------------------------------------------
def phoneme_encoder_forward(params, src_seq, w, mask, cfg):
    tcfg = cfg['transformer']
    d_model = tcfg['encoder_hidden']
    n_layers = tcfg['encoder_layer']
    n_head = tcfg['encoder_head']
    d_k = d_model // n_head
    k1, k2 = tcfg['conv_kernel_size']
    kp = cfg['prenet']['conv_kernel_size']
    B, T = src_seq.shape

    emb = params['emb'][src_seq]                     # embedding gather (tiny XLA glue)
    maskc = mask.astype(jnp.float32)[:, :, None]     # (B, T, 1) 1.0 = padded token
    maskr = mask.astype(jnp.float32)[:, None, :]     # (B, 1, T) key mask
    w3 = w.astype(jnp.float32)[:, None, :]           # (B, 1, d_w)
    pos = params['pos_enc'][:T, :]                   # (T, D)
    # TODO(synk): eval path for T > max_seq_len (recompute sinusoid table) not lowered.

    inputs = [emb, maskc, maskr, w3, pos,
              params['pre_conv1_w'], params['pre_conv1_b'],
              params['pre_conv2_w'], params['pre_conv2_b'],
              params['pre_fc_w'],
              params['wqkv'], params['wo'],
              params['saln0_w'], params['saln0_b'],
              params['ffn_w1'], params['ffn_b1'],
              params['ffn_w2'], params['ffn_b2'],
              params['saln1_w'], params['saln1_b']]
    in_specs = ([_batched_spec(a.shape) for a in inputs[:4]]
                + [_const_spec(a.shape) for a in inputs[4:]])

    kernel = functools.partial(encoder_kernel, n_layers=n_layers, n_head=n_head,
                               d_k=d_k, kp=kp, k1=k1, k2=k2)
    return pl.pallas_call(
        kernel,
        out_shape=jax.ShapeDtypeStruct((B, T, d_model), jnp.float32),
        grid=(B,),
        in_specs=in_specs,
        out_specs=_batched_spec((B, T, d_model)),
        compiler_params=pltpu.CompilerParams(dimension_semantics=("parallel",)),
    )(*inputs)


# ----------------------------------------------------------------------------
# Parameters (deterministic synthetic init, stored in kernel-ready layout)
# ----------------------------------------------------------------------------
def init_params(key, cfg, n_src_vocab):
    tcfg = cfg['transformer']
    d_model = tcfg['encoder_hidden']
    n_layers = tcfg['encoder_layer']
    d_inner = tcfg['conv_filter_size']
    k1, k2 = tcfg['conv_kernel_size']
    kp = cfg['prenet']['conv_kernel_size']
    d_w = cfg['melencoder']['encoder_hidden']
    n_position = cfg['max_seq_len'] + 1

    keys = iter(jax.random.split(key, 256))

    def nrm(shape, scale):
        return scale * jax.random.normal(next(keys), shape, dtype=jnp.float32)

    def conv_w(K, din, dout):
        # conceptual (K, din, dout) conv weight -> (din, K*dout), tap k in column
        # block k, so the kernel can do a single wide matmul per conv.
        wk = nrm((K, din, dout), 1.0 / np.sqrt(K * din))
        return jnp.transpose(wk, (1, 0, 2)).reshape(din, K * dout)

    emb = nrm((n_src_vocab, d_model), 1.0).at[0].set(0.0)       # padding_idx = 0

    params = {
        'emb': emb,
        'pos_enc': get_sinusoid_encoding_table(n_position, d_model),
        'pre_conv1_w': conv_w(kp, d_model, d_model),
        'pre_conv1_b': nrm((1, d_model), 0.02),
        'pre_conv2_w': conv_w(kp, d_model, d_model),
        'pre_conv2_b': nrm((1, d_model), 0.02),
        'pre_fc_w': nrm((d_model, d_model), 1.0 / np.sqrt(d_model)),  # FCBlock bias=False
    }

    # SALN affine bias init so the layer starts as identity: [beta=0 | gamma=1]
    saln_b = jnp.concatenate([jnp.zeros((1, d_model), jnp.float32),
                              jnp.ones((1, d_model), jnp.float32)], axis=-1)

    stk = {k: [] for k in ('wqkv', 'wo', 'saln0_w', 'saln0_b', 'ffn_w1', 'ffn_b1',
                           'ffn_w2', 'ffn_b2', 'saln1_w', 'saln1_b')}
    for _ in range(n_layers):
        # TODO(synk): attention projections assumed bias-free (per LinearNorm usage).
        wq = nrm((d_model, d_model), 1.0 / np.sqrt(d_model))
        wk_ = nrm((d_model, d_model), 1.0 / np.sqrt(d_model))
        wv = nrm((d_model, d_model), 1.0 / np.sqrt(d_model))
        stk['wqkv'].append(jnp.concatenate([wq, wk_, wv], axis=-1))
        stk['wo'].append(nrm((d_model, d_model), 1.0 / np.sqrt(d_model)))
        stk['saln0_w'].append(nrm((d_w, 2 * d_model), 1.0 / np.sqrt(d_w)))
        stk['saln0_b'].append(saln_b)
        stk['ffn_w1'].append(conv_w(k1, d_model, d_inner))
        stk['ffn_b1'].append(nrm((1, d_inner), 0.02))
        stk['ffn_w2'].append(conv_w(k2, d_inner, d_model))
        stk['ffn_b2'].append(nrm((1, d_model), 0.02))
        stk['saln1_w'].append(nrm((d_w, 2 * d_model), 1.0 / np.sqrt(d_w)))
        stk['saln1_b'].append(saln_b)
    for k, v in stk.items():
        params[k] = jnp.stack(v)
    return params


# ----------------------------------------------------------------------------
if __name__ == "__main__":
    cfg = {
        'max_seq_len': 32,
        'transformer': {'encoder_hidden': 32, 'encoder_layer': 2, 'encoder_head': 2,
                        'conv_filter_size': 64, 'conv_kernel_size': (5, 1),
                        'encoder_dropout': 0.1},
        'prenet': {'conv_kernel_size': 3, 'dropout': 0.1},
        'melencoder': {'encoder_hidden': 16},
    }
    n_src_vocab = 40                                  # stands in for len(symbols) + 1

    B, T = 2, 16
    key = jax.random.PRNGKey(0)
    k_param, k_tok, k_style = jax.random.split(key, 3)
    params = init_params(k_param, cfg, n_src_vocab)

    lengths = jnp.array([16, 12], dtype=jnp.int32)
    mask = jnp.arange(T)[None, :] >= lengths[:, None]          # True = padded position
    src_seq = jax.random.randint(k_tok, (B, T), 1, n_src_vocab, dtype=jnp.int32)
    src_seq = jnp.where(mask, 0, src_seq)                       # pad id 0 (padding_idx)
    w = jax.random.normal(k_style, (B, cfg['melencoder']['encoder_hidden']),
                          dtype=jnp.float32)

    fwd = jax.jit(functools.partial(phoneme_encoder_forward, cfg=cfg))
    out = jax.block_until_ready(fwd(params, src_seq, w, mask))

    assert out.shape == (B, T, cfg['transformer']['encoder_hidden'])
    assert bool(jnp.all(jnp.isfinite(out)))
    print("KERNEL_OK")
</pallas_src>

<mosaic_0001>
module attributes {stable_mosaic.version = 11 : i64} {
  func.func @encoder_kernel(%arg0: i32, %arg1: memref<1x16x32xf32, #tpu.memory_space<vmem>>, %arg2: memref<1x16x1xf32, #tpu.memory_space<vmem>>, %arg3: memref<1x1x16xf32, #tpu.memory_space<vmem>>, %arg4: memref<1x1x16xf32, #tpu.memory_space<vmem>>, %arg5: memref<16x32xf32, #tpu.memory_space<vmem>>, %arg6: memref<32x96xf32, #tpu.memory_space<vmem>>, %arg7: memref<1x32xf32, #tpu.memory_space<vmem>>, %arg8: memref<32x96xf32, #tpu.memory_space<vmem>>, %arg9: memref<1x32xf32, #tpu.memory_space<vmem>>, %arg10: memref<32x32xf32, #tpu.memory_space<vmem>>, %arg11: memref<2x32x96xf32, #tpu.memory_space<vmem>>, %arg12: memref<2x32x32xf32, #tpu.memory_space<vmem>>, %arg13: memref<2x16x64xf32, #tpu.memory_space<vmem>>, %arg14: memref<2x1x64xf32, #tpu.memory_space<vmem>>, %arg15: memref<2x32x320xf32, #tpu.memory_space<vmem>>, %arg16: memref<2x1x64xf32, #tpu.memory_space<vmem>>, %arg17: memref<2x64x32xf32, #tpu.memory_space<vmem>>, %arg18: memref<2x1x32xf32, #tpu.memory_space<vmem>>, %arg19: memref<2x16x64xf32, #tpu.memory_space<vmem>>, %arg20: memref<2x1x64xf32, #tpu.memory_space<vmem>>, %arg21: memref<1x16x32xf32, #tpu.memory_space<vmem>>) attributes {dimension_semantics = [#tpu.dimension_semantics<parallel>], iteration_bounds = array<i64: 2>, scalar_prefetch = 0 : i64, scratch_operands = 0 : i64, tpu.core_type = #tpu.core_type<tc>, window_params = [{transform_indices = @transform_0, window_bounds = array<i64: 1, 16, 32>}, {transform_indices = @transform_1, window_bounds = array<i64: 1, 16, 1>}, {transform_indices = @transform_2, window_bounds = array<i64: 1, 1, 16>}, {transform_indices = @transform_3, window_bounds = array<i64: 1, 1, 16>}, {pipeline_mode = #tpu.pipeline_mode<synchronous>, transform_indices = @transform_4, window_bounds = array<i64: 16, 32>}, {pipeline_mode = #tpu.pipeline_mode<synchronous>, transform_indices = @transform_5, window_bounds = array<i64: 32, 96>}, {pipeline_mode = #tpu.pipeline_mode<synchronous>, transform_indices = @transform_6, window_bounds = array<i64: 1, 32>}, {pipeline_mode = #tpu.pipeline_mode<synchronous>, transform_indices = @transform_7, window_bounds = array<i64: 32, 96>}, {pipeline_mode = #tpu.pipeline_mode<synchronous>, transform_indices = @transform_8, window_bounds = array<i64: 1, 32>}, {pipeline_mode = #tpu.pipeline_mode<synchronous>, transform_indices = @transform_9, window_bounds = array<i64: 32, 32>}, {pipeline_mode = #tpu.pipeline_mode<synchronous>, transform_indices = @transform_10, window_bounds = array<i64: 2, 32, 96>}, {pipeline_mode = #tpu.pipeline_mode<synchronous>, transform_indices = @transform_11, window_bounds = array<i64: 2, 32, 32>}, {pipeline_mode = #tpu.pipeline_mode<synchronous>, transform_indices = @transform_12, window_bounds = array<i64: 2, 16, 64>}, {pipeline_mode = #tpu.pipeline_mode<synchronous>, transform_indices = @transform_13, window_bounds = array<i64: 2, 1, 64>}, {pipeline_mode = #tpu.pipeline_mode<synchronous>, transform_indices = @transform_14, window_bounds = array<i64: 2, 32, 320>}, {pipeline_mode = #tpu.pipeline_mode<synchronous>, transform_indices = @transform_15, window_bounds = array<i64: 2, 1, 64>}, {pipeline_mode = #tpu.pipeline_mode<synchronous>, transform_indices = @transform_16, window_bounds = array<i64: 2, 64, 32>}, {pipeline_mode = #tpu.pipeline_mode<synchronous>, transform_indices = @transform_17, window_bounds = array<i64: 2, 1, 32>}, {pipeline_mode = #tpu.pipeline_mode<synchronous>, transform_indices = @transform_18, window_bounds = array<i64: 2, 16, 64>}, {pipeline_mode = #tpu.pipeline_mode<synchronous>, transform_indices = @transform_19, window_bounds = array<i64: 2, 1, 64>}, {transform_indices = @transform_20, window_bounds = array<i64: 1, 16, 32>}]} {
    %c0 = arith.constant 0 : index
    %c0_0 = arith.constant 0 : index
    %c0_1 = arith.constant 0 : index
    %0 = vector.load %arg1[%c0, %c0_0, %c0_1] : memref<1x16x32xf32, #tpu.memory_space<vmem>>, vector<1x16x32xf32>
    %1 = vector.shape_cast %0 : vector<1x16x32xf32> to vector<16x32xf32>
    %c0_2 = arith.constant 0 : index
    %c0_3 = arith.constant 0 : index
    %c0_4 = arith.constant 0 : index
    %2 = vector.load %arg2[%c0_2, %c0_3, %c0_4] : memref<1x16x1xf32, #tpu.memory_space<vmem>>, vector<1x16x1xf32>
    %3 = vector.shape_cast %2 : vector<1x16x1xf32> to vector<16x1xf32>
    %c0_5 = arith.constant 0 : index
    %c0_6 = arith.constant 0 : index
    %c0_7 = arith.constant 0 : index
    %4 = vector.load %arg3[%c0_5, %c0_6, %c0_7] : memref<1x1x16xf32, #tpu.memory_space<vmem>>, vector<1x1x16xf32>
    %5 = vector.shape_cast %4 : vector<1x1x16xf32> to vector<1x16xf32>
    %c0_8 = arith.constant 0 : index
    %c0_9 = arith.constant 0 : index
    %c0_10 = arith.constant 0 : index
    %6 = vector.load %arg4[%c0_8, %c0_9, %c0_10] : memref<1x1x16xf32, #tpu.memory_space<vmem>>, vector<1x1x16xf32>
    %7 = vector.shape_cast %6 : vector<1x1x16xf32> to vector<1x16xf32>
    %8 = tpu.iota {dimensions = array<i32: 0>} : vector<16x16xi32>
    %9 = tpu.iota {dimensions = array<i32: 1>} : vector<16x16xi32>
    %c-2_i32 = arith.constant -2 : i32
    %10 = vector.broadcast %c-2_i32 : i32 to vector<16x16xi32>
    %11 = arith.addi %8, %10 : vector<16x16xi32>
    %12 = arith.cmpi eq, %9, %11 : vector<16x16xi32>
    %13 = arith.extui %12 : vector<16x16xi1> to vector<16x16xi32>
    %14 = arith.sitofp %13 : vector<16x16xi32> to vector<16x16xf32>
    %c-1_i32 = arith.constant -1 : i32
    %15 = vector.broadcast %c-1_i32 : i32 to vector<16x16xi32>
    %16 = arith.addi %8, %15 : vector<16x16xi32>
    %17 = arith.cmpi eq, %9, %16 : vector<16x16xi32>
    %18 = arith.extui %17 : vector<16x16xi1> to vector<16x16xi32>
    %19 = arith.sitofp %18 : vector<16x16xi32> to vector<16x16xf32>
    %c1_i32 = arith.constant 1 : i32
    %20 = vector.broadcast %c1_i32 : i32 to vector<16x16xi32>
    %21 = arith.addi %8, %20 : vector<16x16xi32>
    %22 = arith.cmpi eq, %9, %21 : vector<16x16xi32>
    %23 = arith.extui %22 : vector<16x16xi1> to vector<16x16xi32>
    %24 = arith.sitofp %23 : vector<16x16xi32> to vector<16x16xf32>
    %c2_i32 = arith.constant 2 : i32
    %25 = vector.broadcast %c2_i32 : i32 to vector<16x16xi32>
    %26 = arith.addi %8, %25 : vector<16x16xi32>
    %27 = arith.cmpi eq, %9, %26 : vector<16x16xi32>
    %28 = arith.extui %27 : vector<16x16xi1> to vector<16x16xi32>
    %29 = arith.sitofp %28 : vector<16x16xi32> to vector<16x16xf32>
    %c0_11 = arith.constant 0 : index
    %c0_12 = arith.constant 0 : index
    %30 = vector.load %arg6[%c0_11, %c0_12] : memref<32x96xf32, #tpu.memory_space<vmem>>, vector<32x96xf32>
    %c0_13 = arith.constant 0 : index
    %c0_14 = arith.constant 0 : index
    %31 = vector.load %arg7[%c0_13, %c0_14] : memref<1x32xf32, #tpu.memory_space<vmem>>, vector<1x32xf32>
    %cst = arith.constant dense<0.000000e+00> : vector<16x96xf32>
    %32 = tpu.matmul %1, %30, %cst {dimension_numbers = #tpu.dot_dimension_numbers<[1], [0], [0], [1], [0, 0, 1, 1], [], []>} : vector<16x32xf32>, vector<32x96xf32>, vector<16x96xf32> -> vector<16x96xf32>
    %cst_15 = arith.constant 0.000000e+00 : f32
    %33 = vector.broadcast %cst_15 : f32 to vector<16x32xf32>
    %34 = vector.extract_strided_slice %32 {offsets = [0, 0], sizes = [16, 32], strides = [1, 1]} : vector<16x96xf32> to vector<16x32xf32>
    %cst_16 = arith.constant dense<0.000000e+00> : vector<16x32xf32>
    %35 = tpu.matmul %19, %34, %cst_16 {dimension_numbers = #tpu.dot_dimension_numbers<[1], [0], [0], [1], [0, 0, 1, 1], [], []>} : vector<16x16xf32>, vector<16x32xf32>, vector<16x32xf32> -> vector<16x32xf32>
    %36 = arith.addf %33, %35 : vector<16x32xf32>
    %37 = vector.extract_strided_slice %32 {offsets = [0, 32], sizes = [16, 32], strides = [1, 1]} : vector<16x96xf32> to vector<16x32xf32>
    %38 = arith.addf %36, %37 : vector<16x32xf32>
    %39 = vector.extract_strided_slice %32 {offsets = [0, 64], sizes = [16, 32], strides = [1, 1]} : vector<16x96xf32> to vector<16x32xf32>
    %cst_17 = arith.constant dense<0.000000e+00> : vector<16x32xf32>
    %40 = tpu.matmul %24, %39, %cst_17 {dimension_numbers = #tpu.dot_dimension_numbers<[1], [0], [0], [1], [0, 0, 1, 1], [], []>} : vector<16x16xf32>, vector<16x32xf32>, vector<16x32xf32> -> vector<16x32xf32>
    %41 = arith.addf %38, %40 : vector<16x32xf32>
    %42 = vector.broadcast %31 : vector<1x32xf32> to vector<16x32xf32>
    %43 = arith.addf %41, %42 : vector<16x32xf32>
    %cst_18 = arith.constant 0.000000e+00 : f32
    %44 = vector.broadcast %cst_18 : f32 to vector<16x32xf32>
    %45 = arith.maximumf %43, %44 : vector<16x32xf32>
    %46 = vector.broadcast %cst_18 : f32 to vector<16x32xf32>
    %47 = arith.subf %43, %46 : vector<16x32xf32>
    %48 = arith.cmpf one, %47, %47 : vector<16x32xf32>
    %49 = vector.broadcast %cst_18 : f32 to vector<16x32xf32>
    %50 = arith.addf %43, %49 : vector<16x32xf32>
    %51 = math.absf %47 : vector<16x32xf32>
    %cst_19 = arith.constant 0.000000e+00 : f32
    %52 = vector.broadcast %cst_19 : f32 to vector<16x32xf32>
    %53 = arith.subf %52, %51 : vector<16x32xf32>
    %54 = math.exp %53 : vector<16x32xf32>
    %55 = math.log1p %54 : vector<16x32xf32>
    %56 = arith.addf %45, %55 : vector<16x32xf32>
    %57 = arith.select %48, %50, %56 : vector<16x32xi1>, vector<16x32xf32>
    %58 = math.tanh %57 : vector<16x32xf32>
    %59 = arith.mulf %43, %58 : vector<16x32xf32>
    %c0_20 = arith.constant 0 : index
    %c0_21 = arith.constant 0 : index
    %60 = vector.load %arg8[%c0_20, %c0_21] : memref<32x96xf32, #tpu.memory_space<vmem>>, vector<32x96xf32>
    %c0_22 = arith.constant 0 : index
    %c0_23 = arith.constant 0 : index
    %61 = vector.load %arg9[%c0_22, %c0_23] : memref<1x32xf32, #tpu.memory_space<vmem>>, vector<1x32xf32>
    %cst_24 = arith.constant dense<0.000000e+00> : vector<16x96xf32>
    %62 = tpu.matmul %59, %60, %cst_24 {dimension_numbers = #tpu.dot_dimension_numbers<[1], [0], [0], [1], [0, 0, 1, 1], [], []>} : vector<16x32xf32>, vector<32x96xf32>, vector<16x96xf32> -> vector<16x96xf32>
    %cst_25 = arith.constant 0.000000e+00 : f32
    %63 = vector.broadcast %cst_25 : f32 to vector<16x32xf32>
    %64 = vector.extract_strided_slice %62 {offsets = [0, 0], sizes = [16, 32], strides = [1, 1]} : vector<16x96xf32> to vector<16x32xf32>
    %cst_26 = arith.constant dense<0.000000e+00> : vector<16x32xf32>
    %65 = tpu.matmul %19, %64, %cst_26 {dimension_numbers = #tpu.dot_dimension_numbers<[1], [0], [0], [1], [0, 0, 1, 1], [], []>} : vector<16x16xf32>, vector<16x32xf32>, vector<16x32xf32> -> vector<16x32xf32>
    %66 = arith.addf %63, %65 : vector<16x32xf32>
    %67 = vector.extract_strided_slice %62 {offsets = [0, 32], sizes = [16, 32], strides = [1, 1]} : vector<16x96xf32> to vector<16x32xf32>
    %68 = arith.addf %66, %67 : vector<16x32xf32>
    %69 = vector.extract_strided_slice %62 {offsets = [0, 64], sizes = [16, 32], strides = [1, 1]} : vector<16x96xf32> to vector<16x32xf32>
    %cst_27 = arith.constant dense<0.000000e+00> : vector<16x32xf32>
    %70 = tpu.matmul %24, %69, %cst_27 {dimension_numbers = #tpu.dot_dimension_numbers<[1], [0], [0], [1], [0, 0, 1, 1], [], []>} : vector<16x16xf32>, vector<16x32xf32>, vector<16x32xf32> -> vector<16x32xf32>
    %71 = arith.addf %68, %70 : vector<16x32xf32>
    %72 = vector.broadcast %61 : vector<1x32xf32> to vector<16x32xf32>
    %73 = arith.addf %71, %72 : vector<16x32xf32>
    %cst_28 = arith.constant 0.000000e+00 : f32
    %74 = vector.broadcast %cst_28 : f32 to vector<16x32xf32>
    %75 = arith.maximumf %73, %74 : vector<16x32xf32>
    %76 = vector.broadcast %cst_28 : f32 to vector<16x32xf32>
    %77 = arith.subf %73, %76 : vector<16x32xf32>
    %78 = arith.cmpf one, %77, %77 : vector<16x32xf32>
    %79 = vector.broadcast %cst_28 : f32 to vector<16x32xf32>
    %80 = arith.addf %73, %79 : vector<16x32xf32>
    %81 = math.absf %77 : vector<16x32xf32>
    %cst_29 = arith.constant 0.000000e+00 : f32
    %82 = vector.broadcast %cst_29 : f32 to vector<16x32xf32>
    %83 = arith.subf %82, %81 : vector<16x32xf32>
    %84 = math.exp %83 : vector<16x32xf32>
    %85 = math.log1p %84 : vector<16x32xf32>
    %86 = arith.addf %75, %85 : vector<16x32xf32>
    %87 = arith.select %78, %80, %86 : vector<16x32xi1>, vector<16x32xf32>
    %88 = math.tanh %87 : vector<16x32xf32>
    %89 = arith.mulf %73, %88 : vector<16x32xf32>
    %c0_30 = arith.constant 0 : index
    %c0_31 = arith.constant 0 : index
    %90 = vector.load %arg10[%c0_30, %c0_31] : memref<32x32xf32, #tpu.memory_space<vmem>>, vector<32x32xf32>
    %cst_32 = arith.constant dense<0.000000e+00> : vector<16x32xf32>
    %91 = tpu.matmul %89, %90, %cst_32 {dimension_numbers = #tpu.dot_dimension_numbers<[1], [0], [0], [1], [0, 0, 1, 1], [], []>} : vector<16x32xf32>, vector<32x32xf32>, vector<16x32xf32> -> vector<16x32xf32>
    %cst_33 = arith.constant 0.000000e+00 : f32
    %92 = vector.broadcast %cst_33 : f32 to vector<16x1xf32>
    %93 = arith.cmpf ogt, %3, %92 : vector<16x1xf32>
    %cst_34 = arith.constant 0.000000e+00 : f32
    %94 = vector.shape_cast %93 : vector<16x1xi1> to vector<16x1xi1>
    %95 = vector.broadcast %94 : vector<16x1xi1> to vector<16x32xi1>
    %96 = vector.broadcast %cst_34 : f32 to vector<16x32xf32>
    %97 = arith.select %95, %96, %91 : vector<16x32xi1>, vector<16x32xf32>
    %98 = arith.addf %1, %97 : vector<16x32xf32>
    %c0_35 = arith.constant 0 : index
    %c0_36 = arith.constant 0 : index
    %99 = vector.load %arg5[%c0_35, %c0_36] : memref<16x32xf32, #tpu.memory_space<vmem>>, vector<16x32xf32>
    %100 = arith.addf %98, %99 : vector<16x32xf32>
    %c0_37 = arith.constant 0 : index
    %c0_38 = arith.constant 0 : index
    %c0_39 = arith.constant 0 : index
    %101 = vector.load %arg11[%c0_37, %c0_38, %c0_39] : memref<2x32x96xf32, #tpu.memory_space<vmem>>, vector<1x32x96xf32>
    %102 = vector.shape_cast %101 : vector<1x32x96xf32> to vector<32x96xf32>
    %cst_40 = arith.constant dense<0.000000e+00> : vector<16x96xf32>
    %103 = tpu.matmul %100, %102, %cst_40 {dimension_numbers = #tpu.dot_dimension_numbers<[1], [0], [0], [1], [0, 0, 1, 1], [], []>} : vector<16x32xf32>, vector<32x96xf32>, vector<16x96xf32> -> vector<16x96xf32>
    %c0_41 = arith.constant 0 : index
    %c0_42 = arith.constant 0 : index
    %c0_43 = arith.constant 0 : index
    %104 = vector.load %arg12[%c0_41, %c0_42, %c0_43] : memref<2x32x32xf32, #tpu.memory_space<vmem>>, vector<1x32x32xf32>
    %105 = vector.shape_cast %104 : vector<1x32x32xf32> to vector<32x32xf32>
    %cst_44 = arith.constant 0.000000e+00 : f32
    %106 = vector.broadcast %cst_44 : f32 to vector<16x32xf32>
    %107 = vector.extract_strided_slice %103 {offsets = [0, 0], sizes = [16, 16], strides = [1, 1]} : vector<16x96xf32> to vector<16x16xf32>
    %108 = vector.extract_strided_slice %103 {offsets = [0, 32], sizes = [16, 16], strides = [1, 1]} : vector<16x96xf32> to vector<16x16xf32>
    %109 = vector.extract_strided_slice %103 {offsets = [0, 64], sizes = [16, 16], strides = [1, 1]} : vector<16x96xf32> to vector<16x16xf32>
    %cst_45 = arith.constant dense<0.000000e+00> : vector<16x16xf32>
    %110 = tpu.matmul %107, %108, %cst_45 {dimension_numbers = #tpu.dot_dimension_numbers<[1], [1], [0], [0], [0, 0, 1, 0], [], []>} : vector<16x16xf32>, vector<16x16xf32>, vector<16x16xf32> -> vector<16x16xf32>
    %cst_46 = arith.constant 2.500000e-01 : f32
    %111 = vector.broadcast %cst_46 : f32 to vector<16x16xf32>
    %112 = arith.mulf %110, %111 : vector<16x16xf32>
    %cst_47 = arith.constant 0.000000e+00 : f32
    %113 = vector.broadcast %cst_47 : f32 to vector<1x16xf32>
    %114 = arith.cmpf ogt, %5, %113 : vector<1x16xf32>
    %cst_48 = arith.constant -1.000000e+09 : f32
    %115 = vector.shape_cast %114 : vector<1x16xi1> to vector<1x16xi1>
    %116 = vector.broadcast %115 : vector<1x16xi1> to vector<16x16xi1>
    %117 = vector.broadcast %cst_48 : f32 to vector<16x16xf32>
    %118 = arith.select %116, %117, %112 : vector<16x16xi1>, vector<16x16xf32>
    %cst_49 = arith.constant dense<0xFF800000> : vector<16xf32>
    %119 = vector.multi_reduction <maximumf>, %118, %cst_49 [1] : vector<16x16xf32> to vector<16xf32>
    %cst_50 = arith.constant 0xFF800000 : f32
    %120 = vector.broadcast %cst_50 : f32 to vector<16xf32>
    %121 = arith.maximumf %120, %119 : vector<16xf32>
    %122 = vector.shape_cast %121 : vector<16xf32> to vector<16x1xf32>
    %123 = vector.broadcast %122 : vector<16x1xf32> to vector<16x16xf32>
    %124 = arith.subf %118, %123 : vector<16x16xf32>
    %125 = math.exp %124 : vector<16x16xf32>
    %cst_51 = arith.constant dense<0.000000e+00> : vector<16xf32>
    %126 = vector.multi_reduction <add>, %125, %cst_51 [1] : vector<16x16xf32> to vector<16xf32>
    %127 = vector.shape_cast %126 : vector<16xf32> to vector<16x1xf32>
    %128 = vector.broadcast %127 : vector<16x1xf32> to vector<16x16xf32>
    %129 = arith.divf %125, %128 : vector<16x16xf32>
    %cst_52 = arith.constant dense<0.000000e+00> : vector<16x16xf32>
    %130 = tpu.matmul %129, %109, %cst_52 {dimension_numbers = #tpu.dot_dimension_numbers<[1], [0], [0], [1], [0, 0, 1, 1], [], []>} : vector<16x16xf32>, vector<16x16xf32>, vector<16x16xf32> -> vector<16x16xf32>
    %131 = vector.extract_strided_slice %105 {offsets = [0, 0], sizes = [16, 32], strides = [1, 1]} : vector<32x32xf32> to vector<16x32xf32>
    %cst_53 = arith.constant dense<0.000000e+00> : vector<16x32xf32>
    %132 = tpu.matmul %130, %131, %cst_53 {dimension_numbers = #tpu.dot_dimension_numbers<[1], [0], [0], [1], [0, 0, 1, 1], [], []>} : vector<16x16xf32>, vector<16x32xf32>, vector<16x32xf32> -> vector<16x32xf32>
    %133 = arith.addf %106, %132 : vector<16x32xf32>
    %134 = vector.extract_strided_slice %103 {offsets = [0, 16], sizes = [16, 16], strides = [1, 1]} : vector<16x96xf32> to vector<16x16xf32>
    %135 = vector.extract_strided_slice %103 {offsets = [0, 48], sizes = [16, 16], strides = [1, 1]} : vector<16x96xf32> to vector<16x16xf32>
    %136 = vector.extract_strided_slice %103 {offsets = [0, 80], sizes = [16, 16], strides = [1, 1]} : vector<16x96xf32> to vector<16x16xf32>
    %cst_54 = arith.constant dense<0.000000e+00> : vector<16x16xf32>
    %137 = tpu.matmul %134, %135, %cst_54 {dimension_numbers = #tpu.dot_dimension_numbers<[1], [1], [0], [0], [0, 0, 1, 0], [], []>} : vector<16x16xf32>, vector<16x16xf32>, vector<16x16xf32> -> vector<16x16xf32>
    %cst_55 = arith.constant 2.500000e-01 : f32
    %138 = vector.broadcast %cst_55 : f32 to vector<16x16xf32>
    %139 = arith.mulf %137, %138 : vector<16x16xf32>
    %cst_56 = arith.constant 0.000000e+00 : f32
    %140 = vector.broadcast %cst_56 : f32 to vector<1x16xf32>
    %141 = arith.cmpf ogt, %5, %140 : vector<1x16xf32>
    %cst_57 = arith.constant -1.000000e+09 : f32
    %142 = vector.shape_cast %141 : vector<1x16xi1> to vector<1x16xi1>
    %143 = vector.broadcast %142 : vector<1x16xi1> to vector<16x16xi1>
    %144 = vector.broadcast %cst_57 : f32 to vector<16x16xf32>
    %145 = arith.select %143, %144, %139 : vector<16x16xi1>, vector<16x16xf32>
    %cst_58 = arith.constant dense<0xFF800000> : vector<16xf32>
    %146 = vector.multi_reduction <maximumf>, %145, %cst_58 [1] : vector<16x16xf32> to vector<16xf32>
    %cst_59 = arith.constant 0xFF800000 : f32
    %147 = vector.broadcast %cst_59 : f32 to vector<16xf32>
    %148 = arith.maximumf %147, %146 : vector<16xf32>
    %149 = vector.shape_cast %148 : vector<16xf32> to vector<16x1xf32>
    %150 = vector.broadcast %149 : vector<16x1xf32> to vector<16x16xf32>
    %151 = arith.subf %145, %150 : vector<16x16xf32>
    %152 = math.exp %151 : vector<16x16xf32>
    %cst_60 = arith.constant dense<0.000000e+00> : vector<16xf32>
    %153 = vector.multi_reduction <add>, %152, %cst_60 [1] : vector<16x16xf32> to vector<16xf32>
    %154 = vector.shape_cast %153 : vector<16xf32> to vector<16x1xf32>
    %155 = vector.broadcast %154 : vector<16x1xf32> to vector<16x16xf32>
    %156 = arith.divf %152, %155 : vector<16x16xf32>
    %cst_61 = arith.constant dense<0.000000e+00> : vector<16x16xf32>
    %157 = tpu.matmul %156, %136, %cst_61 {dimension_numbers = #tpu.dot_dimension_numbers<[1], [0], [0], [1], [0, 0, 1, 1], [], []>} : vector<16x16xf32>, vector<16x16xf32>, vector<16x16xf32> -> vector<16x16xf32>
    %158 = vector.extract_strided_slice %105 {offsets = [16, 0], sizes = [16, 32], strides = [1, 1]} : vector<32x32xf32> to vector<16x32xf32>
    %cst_62 = arith.constant dense<0.000000e+00> : vector<16x32xf32>
    %159 = tpu.matmul %157, %158, %cst_62 {dimension_numbers = #tpu.dot_dimension_numbers<[1], [0], [0], [1], [0, 0, 1, 1], [], []>} : vector<16x16xf32>, vector<16x32xf32>, vector<16x32xf32> -> vector<16x32xf32>
    %160 = arith.addf %133, %159 : vector<16x32xf32>
    %161 = arith.addf %160, %100 : vector<16x32xf32>
    %c0_63 = arith.constant 0 : index
    %c0_64 = arith.constant 0 : index
    %c0_65 = arith.constant 0 : index
    %162 = vector.load %arg13[%c0_63, %c0_64, %c0_65] : memref<2x16x64xf32, #tpu.memory_space<vmem>>, vector<1x16x64xf32>
    %163 = vector.shape_cast %162 : vector<1x16x64xf32> to vector<16x64xf32>
    %cst_66 = arith.constant dense<0.000000e+00> : vector<1x64xf32>
    %164 = tpu.matmul %7, %163, %cst_66 {dimension_numbers = #tpu.dot_dimension_numbers<[1], [0], [0], [1], [0, 0, 1, 1], [], []>} : vector<1x16xf32>, vector<16x64xf32>, vector<1x64xf32> -> vector<1x64xf32>
    %c0_67 = arith.constant 0 : index
    %c0_68 = arith.constant 0 : index
    %c0_69 = arith.constant 0 : index
    %165 = vector.load %arg14[%c0_67, %c0_68, %c0_69] : memref<2x1x64xf32, #tpu.memory_space<vmem>>, vector<1x1x64xf32>
    %166 = vector.shape_cast %165 : vector<1x1x64xf32> to vector<1x64xf32>
    %167 = arith.addf %164, %166 : vector<1x64xf32>
    %cst_70 = arith.constant dense<0.000000e+00> : vector<16xf32>
    %168 = vector.multi_reduction <add>, %161, %cst_70 [1] : vector<16x32xf32> to vector<16xf32>
    %169 = vector.shape_cast %168 : vector<16xf32> to vector<16x1xf32>
    %cst_71 = arith.constant 3.200000e+01 : f32
    %170 = vector.broadcast %cst_71 : f32 to vector<16x1xf32>
    %171 = arith.divf %169, %170 : vector<16x1xf32>
    %172 = vector.broadcast %171 : vector<16x1xf32> to vector<16x32xf32>
    %173 = arith.subf %161, %172 : vector<16x32xf32>
    %174 = arith.mulf %173, %173 : vector<16x32xf32>
    %cst_72 = arith.constant dense<0.000000e+00> : vector<16xf32>
    %175 = vector.multi_reduction <add>, %174, %cst_72 [1] : vector<16x32xf32> to vector<16xf32>
    %176 = vector.shape_cast %175 : vector<16xf32> to vector<16x1xf32>
    %cst_73 = arith.constant 3.100000e+01 : f32
    %177 = vector.broadcast %cst_73 : f32 to vector<16x1xf32>
    %178 = arith.divf %176, %177 : vector<16x1xf32>
    %179 = vector.broadcast %171 : vector<16x1xf32> to vector<16x32xf32>
    %180 = arith.subf %161, %179 : vector<16x32xf32>
    %cst_74 = arith.constant 9.99999997E-7 : f32
    %181 = vector.broadcast %cst_74 : f32 to vector<16x1xf32>
    %182 = arith.addf %178, %181 : vector<16x1xf32>
    %183 = math.rsqrt %182 : vector<16x1xf32>
    %184 = vector.broadcast %183 : vector<16x1xf32> to vector<16x32xf32>
    %185 = arith.mulf %180, %184 : vector<16x32xf32>
    %186 = vector.extract_strided_slice %167 {offsets = [0, 0], sizes = [1, 32], strides = [1, 1]} : vector<1x64xf32> to vector<1x32xf32>
    %187 = vector.extract_strided_slice %167 {offsets = [0, 32], sizes = [1, 32], strides = [1, 1]} : vector<1x64xf32> to vector<1x32xf32>
    %cst_75 = arith.constant 0.000000e+00 : f32
    %188 = vector.broadcast %cst_75 : f32 to vector<16x1xf32>
    %189 = arith.cmpf ogt, %3, %188 : vector<16x1xf32>
    %190 = vector.broadcast %187 : vector<1x32xf32> to vector<16x32xf32>
    %191 = arith.mulf %190, %185 : vector<16x32xf32>
    %192 = vector.broadcast %186 : vector<1x32xf32> to vector<16x32xf32>
    %193 = arith.addf %191, %192 : vector<16x32xf32>
    %cst_76 = arith.constant 0.000000e+00 : f32
    %194 = vector.shape_cast %189 : vector<16x1xi1> to vector<16x1xi1>
    %195 = vector.broadcast %194 : vector<16x1xi1> to vector<16x32xi1>
    %196 = vector.broadcast %cst_76 : f32 to vector<16x32xf32>
    %197 = arith.select %195, %196, %193 : vector<16x32xi1>, vector<16x32xf32>
    %c0_77 = arith.constant 0 : index
    %c0_78 = arith.constant 0 : index
    %c0_79 = arith.constant 0 : index
    %198 = vector.load %arg15[%c0_77, %c0_78, %c0_79] : memref<2x32x320xf32, #tpu.memory_space<vmem>>, vector<1x32x320xf32>
    %199 = vector.shape_cast %198 : vector<1x32x320xf32> to vector<32x320xf32>
    %c0_80 = arith.constant 0 : index
    %c0_81 = arith.constant 0 : index
    %c0_82 = arith.constant 0 : index
    %200 = vector.load %arg16[%c0_80, %c0_81, %c0_82] : memref<2x1x64xf32, #tpu.memory_space<vmem>>, vector<1x1x64xf32>
    %201 = vector.shape_cast %200 : vector<1x1x64xf32> to vector<1x64xf32>
    %cst_83 = arith.constant dense<0.000000e+00> : vector<16x320xf32>
    %202 = tpu.matmul %197, %199, %cst_83 {dimension_numbers = #tpu.dot_dimension_numbers<[1], [0], [0], [1], [0, 0, 1, 1], [], []>} : vector<16x32xf32>, vector<32x320xf32>, vector<16x320xf32> -> vector<16x320xf32>
    %cst_84 = arith.constant 0.000000e+00 : f32
    %203 = vector.broadcast %cst_84 : f32 to vector<16x64xf32>
    %204 = vector.extract_strided_slice %202 {offsets = [0, 0], sizes = [16, 64], strides = [1, 1]} : vector<16x320xf32> to vector<16x64xf32>
    %cst_85 = arith.constant dense<0.000000e+00> : vector<16x64xf32>
    %205 = tpu.matmul %14, %204, %cst_85 {dimension_numbers = #tpu.dot_dimension_numbers<[1], [0], [0], [1], [0, 0, 1, 1], [], []>} : vector<16x16xf32>, vector<16x64xf32>, vector<16x64xf32> -> vector<16x64xf32>
    %206 = arith.addf %203, %205 : vector<16x64xf32>
    %207 = vector.extract_strided_slice %202 {offsets = [0, 64], sizes = [16, 64], strides = [1, 1]} : vector<16x320xf32> to vector<16x64xf32>
    %cst_86 = arith.constant dense<0.000000e+00> : vector<16x64xf32>
    %208 = tpu.matmul %19, %207, %cst_86 {dimension_numbers = #tpu.dot_dimension_numbers<[1], [0], [0], [1], [0, 0, 1, 1], [], []>} : vector<16x16xf32>, vector<16x64xf32>, vector<16x64xf32> -> vector<16x64xf32>
    %209 = arith.addf %206, %208 : vector<16x64xf32>
    %210 = vector.extract_strided_slice %202 {offsets = [0, 128], sizes = [16, 64], strides = [1, 1]} : vector<16x320xf32> to vector<16x64xf32>
    %211 = arith.addf %209, %210 : vector<16x64xf32>
    %212 = vector.extract_strided_slice %202 {offsets = [0, 192], sizes = [16, 64], strides = [1, 1]} : vector<16x320xf32> to vector<16x64xf32>
    %cst_87 = arith.constant dense<0.000000e+00> : vector<16x64xf32>
    %213 = tpu.matmul %24, %212, %cst_87 {dimension_numbers = #tpu.dot_dimension_numbers<[1], [0], [0], [1], [0, 0, 1, 1], [], []>} : vector<16x16xf32>, vector<16x64xf32>, vector<16x64xf32> -> vector<16x64xf32>
    %214 = arith.addf %211, %213 : vector<16x64xf32>
    %215 = vector.extract_strided_slice %202 {offsets = [0, 256], sizes = [16, 64], strides = [1, 1]} : vector<16x320xf32> to vector<16x64xf32>
    %cst_88 = arith.constant dense<0.000000e+00> : vector<16x64xf32>
    %216 = tpu.matmul %29, %215, %cst_88 {dimension_numbers = #tpu.dot_dimension_numbers<[1], [0], [0], [1], [0, 0, 1, 1], [], []>} : vector<16x16xf32>, vector<16x64xf32>, vector<16x64xf32> -> vector<16x64xf32>
    %217 = arith.addf %214, %216 : vector<16x64xf32>
    %218 = vector.broadcast %201 : vector<1x64xf32> to vector<16x64xf32>
    %219 = arith.addf %217, %218 : vector<16x64xf32>
    %cst_89 = arith.constant 0.000000e+00 : f32
    %220 = vector.broadcast %cst_89 : f32 to vector<16x64xf32>
    %221 = arith.maximumf %219, %220 : vector<16x64xf32>
    %c0_90 = arith.constant 0 : index
    %c0_91 = arith.constant 0 : index
    %c0_92 = arith.constant 0 : index
    %222 = vector.load %arg17[%c0_90, %c0_91, %c0_92] : memref<2x64x32xf32, #tpu.memory_space<vmem>>, vector<1x64x32xf32>
    %223 = vector.shape_cast %222 : vector<1x64x32xf32> to vector<64x32xf32>
    %c0_93 = arith.constant 0 : index
    %c0_94 = arith.constant 0 : index
    %c0_95 = arith.constant 0 : index
    %224 = vector.load %arg18[%c0_93, %c0_94, %c0_95] : memref<2x1x32xf32, #tpu.memory_space<vmem>>, vector<1x1x32xf32>
    %225 = vector.shape_cast %224 : vector<1x1x32xf32> to vector<1x32xf32>
    %cst_96 = arith.constant dense<0.000000e+00> : vector<16x32xf32>
    %226 = tpu.matmul %221, %223, %cst_96 {dimension_numbers = #tpu.dot_dimension_numbers<[1], [0], [0], [1], [0, 0, 1, 1], [], []>} : vector<16x64xf32>, vector<64x32xf32>, vector<16x32xf32> -> vector<16x32xf32>
    %227 = vector.broadcast %225 : vector<1x32xf32> to vector<16x32xf32>
    %228 = arith.addf %226, %227 : vector<16x32xf32>
    %229 = arith.addf %228, %197 : vector<16x32xf32>
    %c0_97 = arith.constant 0 : index
    %c0_98 = arith.constant 0 : index
    %c0_99 = arith.constant 0 : index
    %230 = vector.load %arg19[%c0_97, %c0_98, %c0_99] : memref<2x16x64xf32, #tpu.memory_space<vmem>>, vector<1x16x64xf32>
    %231 = vector.shape_cast %230 : vector<1x16x64xf32> to vector<16x64xf32>
    %cst_100 = arith.constant dense<0.000000e+00> : vector<1x64xf32>
    %232 = tpu.matmul %7, %231, %cst_100 {dimension_numbers = #tpu.dot_dimension_numbers<[1], [0], [0], [1], [0, 0, 1, 1], [], []>} : vector<1x16xf32>, vector<16x64xf32>, vector<1x64xf32> -> vector<1x64xf32>
    %c0_101 = arith.constant 0 : index
    %c0_102 = arith.constant 0 : index
    %c0_103 = arith.constant 0 : index
    %233 = vector.load %arg20[%c0_101, %c0_102, %c0_103] : memref<2x1x64xf32, #tpu.memory_space<vmem>>, vector<1x1x64xf32>
    %234 = vector.shape_cast %233 : vector<1x1x64xf32> to vector<1x64xf32>
    %235 = arith.addf %232, %234 : vector<1x64xf32>
    %cst_104 = arith.constant dense<0.000000e+00> : vector<16xf32>
    %236 = vector.multi_reduction <add>, %229, %cst_104 [1] : vector<16x32xf32> to vector<16xf32>
    %237 = vector.shape_cast %236 : vector<16xf32> to vector<16x1xf32>
    %cst_105 = arith.constant 3.200000e+01 : f32
    %238 = vector.broadcast %cst_105 : f32 to vector<16x1xf32>
    %239 = arith.divf %237, %238 : vector<16x1xf32>
    %240 = vector.broadcast %239 : vector<16x1xf32> to vector<16x32xf32>
    %241 = arith.subf %229, %240 : vector<16x32xf32>
    %242 = arith.mulf %241, %241 : vector<16x32xf32>
    %cst_106 = arith.constant dense<0.000000e+00> : vector<16xf32>
    %243 = vector.multi_reduction <add>, %242, %cst_106 [1] : vector<16x32xf32> to vector<16xf32>
    %244 = vector.shape_cast %243 : vector<16xf32> to vector<16x1xf32>
    %cst_107 = arith.constant 3.100000e+01 : f32
    %245 = vector.broadcast %cst_107 : f32 to vector<16x1xf32>
    %246 = arith.divf %244, %245 : vector<16x1xf32>
    %247 = vector.broadcast %239 : vector<16x1xf32> to vector<16x32xf32>
    %248 = arith.subf %229, %247 : vector<16x32xf32>
    %cst_108 = arith.constant 9.99999997E-7 : f32
    %249 = vector.broadcast %cst_108 : f32 to vector<16x1xf32>
    %250 = arith.addf %246, %249 : vector<16x1xf32>
    %251 = math.rsqrt %250 : vector<16x1xf32>
    %252 = vector.broadcast %251 : vector<16x1xf32> to vector<16x32xf32>
    %253 = arith.mulf %248, %252 : vector<16x32xf32>
    %254 = vector.extract_strided_slice %235 {offsets = [0, 0], sizes = [1, 32], strides = [1, 1]} : vector<1x64xf32> to vector<1x32xf32>
    %255 = vector.extract_strided_slice %235 {offsets = [0, 32], sizes = [1, 32], strides = [1, 1]} : vector<1x64xf32> to vector<1x32xf32>
    %cst_109 = arith.constant 0.000000e+00 : f32
    %256 = vector.broadcast %cst_109 : f32 to vector<16x1xf32>
    %257 = arith.cmpf ogt, %3, %256 : vector<16x1xf32>
    %258 = vector.broadcast %255 : vector<1x32xf32> to vector<16x32xf32>
    %259 = arith.mulf %258, %253 : vector<16x32xf32>
    %260 = vector.broadcast %254 : vector<1x32xf32> to vector<16x32xf32>
    %261 = arith.addf %259, %260 : vector<16x32xf32>
    %cst_110 = arith.constant 0.000000e+00 : f32
    %262 = vector.shape_cast %257 : vector<16x1xi1> to vector<16x1xi1>
    %263 = vector.broadcast %262 : vector<16x1xi1> to vector<16x32xi1>
    %264 = vector.broadcast %cst_110 : f32 to vector<16x32xf32>
    %265 = arith.select %263, %264, %261 : vector<16x32xi1>, vector<16x32xf32>
    %c1 = arith.constant 1 : index
    %c0_111 = arith.constant 0 : index
    %c0_112 = arith.constant 0 : index
    %266 = vector.load %arg11[%c1, %c0_111, %c0_112] : memref<2x32x96xf32, #tpu.memory_space<vmem>>, vector<1x32x96xf32>
    %267 = vector.shape_cast %266 : vector<1x32x96xf32> to vector<32x96xf32>
    %cst_113 = arith.constant dense<0.000000e+00> : vector<16x96xf32>
    %268 = tpu.matmul %265, %267, %cst_113 {dimension_numbers = #tpu.dot_dimension_numbers<[1], [0], [0], [1], [0, 0, 1, 1], [], []>} : vector<16x32xf32>, vector<32x96xf32>, vector<16x96xf32> -> vector<16x96xf32>
    %c1_114 = arith.constant 1 : index
    %c0_115 = arith.constant 0 : index
    %c0_116 = arith.constant 0 : index
    %269 = vector.load %arg12[%c1_114, %c0_115, %c0_116] : memref<2x32x32xf32, #tpu.memory_space<vmem>>, vector<1x32x32xf32>
    %270 = vector.shape_cast %269 : vector<1x32x32xf32> to vector<32x32xf32>
    %cst_117 = arith.constant 0.000000e+00 : f32
    %271 = vector.broadcast %cst_117 : f32 to vector<16x32xf32>
    %272 = vector.extract_strided_slice %268 {offsets = [0, 0], sizes = [16, 16], strides = [1, 1]} : vector<16x96xf32> to vector<16x16xf32>
    %273 = vector.extract_strided_slice %268 {offsets = [0, 32], sizes = [16, 16], strides = [1, 1]} : vector<16x96xf32> to vector<16x16xf32>
    %274 = vector.extract_strided_slice %268 {offsets = [0, 64], sizes = [16, 16], strides = [1, 1]} : vector<16x96xf32> to vector<16x16xf32>
    %cst_118 = arith.constant dense<0.000000e+00> : vector<16x16xf32>
    %275 = tpu.matmul %272, %273, %cst_118 {dimension_numbers = #tpu.dot_dimension_numbers<[1], [1], [0], [0], [0, 0, 1, 0], [], []>} : vector<16x16xf32>, vector<16x16xf32>, vector<16x16xf32> -> vector<16x16xf32>
    %cst_119 = arith.constant 2.500000e-01 : f32
    %276 = vector.broadcast %cst_119 : f32 to vector<16x16xf32>
    %277 = arith.mulf %275, %276 : vector<16x16xf32>
    %cst_120 = arith.constant 0.000000e+00 : f32
    %278 = vector.broadcast %cst_120 : f32 to vector<1x16xf32>
    %279 = arith.cmpf ogt, %5, %278 : vector<1x16xf32>
    %cst_121 = arith.constant -1.000000e+09 : f32
    %280 = vector.shape_cast %279 : vector<1x16xi1> to vector<1x16xi1>
    %281 = vector.broadcast %280 : vector<1x16xi1> to vector<16x16xi1>
    %282 = vector.broadcast %cst_121 : f32 to vector<16x16xf32>
    %283 = arith.select %281, %282, %277 : vector<16x16xi1>, vector<16x16xf32>
    %cst_122 = arith.constant dense<0xFF800000> : vector<16xf32>
    %284 = vector.multi_reduction <maximumf>, %283, %cst_122 [1] : vector<16x16xf32> to vector<16xf32>
    %cst_123 = arith.constant 0xFF800000 : f32
    %285 = vector.broadcast %cst_123 : f32 to vector<16xf32>
    %286 = arith.maximumf %285, %284 : vector<16xf32>
    %287 = vector.shape_cast %286 : vector<16xf32> to vector<16x1xf32>
    %288 = vector.broadcast %287 : vector<16x1xf32> to vector<16x16xf32>
    %289 = arith.subf %283, %288 : vector<16x16xf32>
    %290 = math.exp %289 : vector<16x16xf32>
    %cst_124 = arith.constant dense<0.000000e+00> : vector<16xf32>
    %291 = vector.multi_reduction <add>, %290, %cst_124 [1] : vector<16x16xf32> to vector<16xf32>
    %292 = vector.shape_cast %291 : vector<16xf32> to vector<16x1xf32>
    %293 = vector.broadcast %292 : vector<16x1xf32> to vector<16x16xf32>
    %294 = arith.divf %290, %293 : vector<16x16xf32>
    %cst_125 = arith.constant dense<0.000000e+00> : vector<16x16xf32>
    %295 = tpu.matmul %294, %274, %cst_125 {dimension_numbers = #tpu.dot_dimension_numbers<[1], [0], [0], [1], [0, 0, 1, 1], [], []>} : vector<16x16xf32>, vector<16x16xf32>, vector<16x16xf32> -> vector<16x16xf32>
    %296 = vector.extract_strided_slice %270 {offsets = [0, 0], sizes = [16, 32], strides = [1, 1]} : vector<32x32xf32> to vector<16x32xf32>
    %cst_126 = arith.constant dense<0.000000e+00> : vector<16x32xf32>
    %297 = tpu.matmul %295, %296, %cst_126 {dimension_numbers = #tpu.dot_dimension_numbers<[1], [0], [0], [1], [0, 0, 1, 1], [], []>} : vector<16x16xf32>, vector<16x32xf32>, vector<16x32xf32> -> vector<16x32xf32>
    %298 = arith.addf %271, %297 : vector<16x32xf32>
    %299 = vector.extract_strided_slice %268 {offsets = [0, 16], sizes = [16, 16], strides = [1, 1]} : vector<16x96xf32> to vector<16x16xf32>
    %300 = vector.extract_strided_slice %268 {offsets = [0, 48], sizes = [16, 16], strides = [1, 1]} : vector<16x96xf32> to vector<16x16xf32>
    %301 = vector.extract_strided_slice %268 {offsets = [0, 80], sizes = [16, 16], strides = [1, 1]} : vector<16x96xf32> to vector<16x16xf32>
    %cst_127 = arith.constant dense<0.000000e+00> : vector<16x16xf32>
    %302 = tpu.matmul %299, %300, %cst_127 {dimension_numbers = #tpu.dot_dimension_numbers<[1], [1], [0], [0], [0, 0, 1, 0], [], []>} : vector<16x16xf32>, vector<16x16xf32>, vector<16x16xf32> -> vector<16x16xf32>
    %cst_128 = arith.constant 2.500000e-01 : f32
    %303 = vector.broadcast %cst_128 : f32 to vector<16x16xf32>
    %304 = arith.mulf %302, %303 : vector<16x16xf32>
    %cst_129 = arith.constant 0.000000e+00 : f32
    %305 = vector.broadcast %cst_129 : f32 to vector<1x16xf32>
    %306 = arith.cmpf ogt, %5, %305 : vector<1x16xf32>
    %cst_130 = arith.constant -1.000000e+09 : f32
    %307 = vector.shape_cast %306 : vector<1x16xi1> to vector<1x16xi1>
    %308 = vector.broadcast %307 : vector<1x16xi1> to vector<16x16xi1>
    %309 = vector.broadcast %cst_130 : f32 to vector<16x16xf32>
    %310 = arith.select %308, %309, %304 : vector<16x16xi1>, vector<16x16xf32>
    %cst_131 = arith.constant dense<0xFF800000> : vector<16xf32>
    %311 = vector.multi_reduction <maximumf>, %310, %cst_131 [1] : vector<16x16xf32> to vector<16xf32>
    %cst_132 = arith.constant 0xFF800000 : f32
    %312 = vector.broadcast %cst_132 : f32 to vector<16xf32>
    %313 = arith.maximumf %312, %311 : vector<16xf32>
    %314 = vector.shape_cast %313 : vector<16xf32> to vector<16x1xf32>
    %315 = vector.broadcast %314 : vector<16x1xf32> to vector<16x16xf32>
    %316 = arith.subf %310, %315 : vector<16x16xf32>
    %317 = math.exp %316 : vector<16x16xf32>
    %cst_133 = arith.constant dense<0.000000e+00> : vector<16xf32>
    %318 = vector.multi_reduction <add>, %317, %cst_133 [1] : vector<16x16xf32> to vector<16xf32>
    %319 = vector.shape_cast %318 : vector<16xf32> to vector<16x1xf32>
    %320 = vector.broadcast %319 : vector<16x1xf32> to vector<16x16xf32>
    %321 = arith.divf %317, %320 : vector<16x16xf32>
    %cst_134 = arith.constant dense<0.000000e+00> : vector<16x16xf32>
    %322 = tpu.matmul %321, %301, %cst_134 {dimension_numbers = #tpu.dot_dimension_numbers<[1], [0], [0], [1], [0, 0, 1, 1], [], []>} : vector<16x16xf32>, vector<16x16xf32>, vector<16x16xf32> -> vector<16x16xf32>
    %323 = vector.extract_strided_slice %270 {offsets = [16, 0], sizes = [16, 32], strides = [1, 1]} : vector<32x32xf32> to vector<16x32xf32>
    %cst_135 = arith.constant dense<0.000000e+00> : vector<16x32xf32>
    %324 = tpu.matmul %322, %323, %cst_135 {dimension_numbers = #tpu.dot_dimension_numbers<[1], [0], [0], [1], [0, 0, 1, 1], [], []>} : vector<16x16xf32>, vector<16x32xf32>, vector<16x32xf32> -> vector<16x32xf32>
    %325 = arith.addf %298, %324 : vector<16x32xf32>
    %326 = arith.addf %325, %265 : vector<16x32xf32>
    %c1_136 = arith.constant 1 : index
    %c0_137 = arith.constant 0 : index
    %c0_138 = arith.constant 0 : index
    %327 = vector.load %arg13[%c1_136, %c0_137, %c0_138] : memref<2x16x64xf32, #tpu.memory_space<vmem>>, vector<1x16x64xf32>
    %328 = vector.shape_cast %327 : vector<1x16x64xf32> to vector<16x64xf32>
    %cst_139 = arith.constant dense<0.000000e+00> : vector<1x64xf32>
    %329 = tpu.matmul %7, %328, %cst_139 {dimension_numbers = #tpu.dot_dimension_numbers<[1], [0], [0], [1], [0, 0, 1, 1], [], []>} : vector<1x16xf32>, vector<16x64xf32>, vector<1x64xf32> -> vector<1x64xf32>
    %c1_140 = arith.constant 1 : index
    %c0_141 = arith.constant 0 : index
    %c0_142 = arith.constant 0 : index
    %330 = vector.load %arg14[%c1_140, %c0_141, %c0_142] : memref<2x1x64xf32, #tpu.memory_space<vmem>>, vector<1x1x64xf32>
    %331 = vector.shape_cast %330 : vector<1x1x64xf32> to vector<1x64xf32>
    %332 = arith.addf %329, %331 : vector<1x64xf32>
    %cst_143 = arith.constant dense<0.000000e+00> : vector<16xf32>
    %333 = vector.multi_reduction <add>, %326, %cst_143 [1] : vector<16x32xf32> to vector<16xf32>
    %334 = vector.shape_cast %333 : vector<16xf32> to vector<16x1xf32>
    %cst_144 = arith.constant 3.200000e+01 : f32
    %335 = vector.broadcast %cst_144 : f32 to vector<16x1xf32>
    %336 = arith.divf %334, %335 : vector<16x1xf32>
    %337 = vector.broadcast %336 : vector<16x1xf32> to vector<16x32xf32>
    %338 = arith.subf %326, %337 : vector<16x32xf32>
    %339 = arith.mulf %338, %338 : vector<16x32xf32>
    %cst_145 = arith.constant dense<0.000000e+00> : vector<16xf32>
    %340 = vector.multi_reduction <add>, %339, %cst_145 [1] : vector<16x32xf32> to vector<16xf32>
    %341 = vector.shape_cast %340 : vector<16xf32> to vector<16x1xf32>
    %cst_146 = arith.constant 3.100000e+01 : f32
    %342 = vector.broadcast %cst_146 : f32 to vector<16x1xf32>
    %343 = arith.divf %341, %342 : vector<16x1xf32>
    %344 = vector.broadcast %336 : vector<16x1xf32> to vector<16x32xf32>
    %345 = arith.subf %326, %344 : vector<16x32xf32>
    %cst_147 = arith.constant 9.99999997E-7 : f32
    %346 = vector.broadcast %cst_147 : f32 to vector<16x1xf32>
    %347 = arith.addf %343, %346 : vector<16x1xf32>
    %348 = math.rsqrt %347 : vector<16x1xf32>
    %349 = vector.broadcast %348 : vector<16x1xf32> to vector<16x32xf32>
    %350 = arith.mulf %345, %349 : vector<16x32xf32>
    %351 = vector.extract_strided_slice %332 {offsets = [0, 0], sizes = [1, 32], strides = [1, 1]} : vector<1x64xf32> to vector<1x32xf32>
    %352 = vector.extract_strided_slice %332 {offsets = [0, 32], sizes = [1, 32], strides = [1, 1]} : vector<1x64xf32> to vector<1x32xf32>
    %cst_148 = arith.constant 0.000000e+00 : f32
    %353 = vector.broadcast %cst_148 : f32 to vector<16x1xf32>
    %354 = arith.cmpf ogt, %3, %353 : vector<16x1xf32>
    %355 = vector.broadcast %352 : vector<1x32xf32> to vector<16x32xf32>
    %356 = arith.mulf %355, %350 : vector<16x32xf32>
    %357 = vector.broadcast %351 : vector<1x32xf32> to vector<16x32xf32>
    %358 = arith.addf %356, %357 : vector<16x32xf32>
    %cst_149 = arith.constant 0.000000e+00 : f32
    %359 = vector.shape_cast %354 : vector<16x1xi1> to vector<16x1xi1>
    %360 = vector.broadcast %359 : vector<16x1xi1> to vector<16x32xi1>
    %361 = vector.broadcast %cst_149 : f32 to vector<16x32xf32>
    %362 = arith.select %360, %361, %358 : vector<16x32xi1>, vector<16x32xf32>
    %c1_150 = arith.constant 1 : index
    %c0_151 = arith.constant 0 : index
    %c0_152 = arith.constant 0 : index
    %363 = vector.load %arg15[%c1_150, %c0_151, %c0_152] : memref<2x32x320xf32, #tpu.memory_space<vmem>>, vector<1x32x320xf32>
    %364 = vector.shape_cast %363 : vector<1x32x320xf32> to vector<32x320xf32>
    %c1_153 = arith.constant 1 : index
    %c0_154 = arith.constant 0 : index
    %c0_155 = arith.constant 0 : index
    %365 = vector.load %arg16[%c1_153, %c0_154, %c0_155] : memref<2x1x64xf32, #tpu.memory_space<vmem>>, vector<1x1x64xf32>
    %366 = vector.shape_cast %365 : vector<1x1x64xf32> to vector<1x64xf32>
    %cst_156 = arith.constant dense<0.000000e+00> : vector<16x320xf32>
    %367 = tpu.matmul %362, %364, %cst_156 {dimension_numbers = #tpu.dot_dimension_numbers<[1], [0], [0], [1], [0, 0, 1, 1], [], []>} : vector<16x32xf32>, vector<32x320xf32>, vector<16x320xf32> -> vector<16x320xf32>
    %cst_157 = arith.constant 0.000000e+00 : f32
    %368 = vector.broadcast %cst_157 : f32 to vector<16x64xf32>
    %369 = vector.extract_strided_slice %367 {offsets = [0, 0], sizes = [16, 64], strides = [1, 1]} : vector<16x320xf32> to vector<16x64xf32>
    %cst_158 = arith.constant dense<0.000000e+00> : vector<16x64xf32>
    %370 = tpu.matmul %14, %369, %cst_158 {dimension_numbers = #tpu.dot_dimension_numbers<[1], [0], [0], [1], [0, 0, 1, 1], [], []>} : vector<16x16xf32>, vector<16x64xf32>, vector<16x64xf32> -> vector<16x64xf32>
    %371 = arith.addf %368, %370 : vector<16x64xf32>
    %372 = vector.extract_strided_slice %367 {offsets = [0, 64], sizes = [16, 64], strides = [1, 1]} : vector<16x320xf32> to vector<16x64xf32>
    %cst_159 = arith.constant dense<0.000000e+00> : vector<16x64xf32>
    %373 = tpu.matmul %19, %372, %cst_159 {dimension_numbers = #tpu.dot_dimension_numbers<[1], [0], [0], [1], [0, 0, 1, 1], [], []>} : vector<16x16xf32>, vector<16x64xf32>, vector<16x64xf32> -> vector<16x64xf32>
    %374 = arith.addf %371, %373 : vector<16x64xf32>
    %375 = vector.extract_strided_slice %367 {offsets = [0, 128], sizes = [16, 64], strides = [1, 1]} : vector<16x320xf32> to vector<16x64xf32>
    %376 = arith.addf %374, %375 : vector<16x64xf32>
    %377 = vector.extract_strided_slice %367 {offsets = [0, 192], sizes = [16, 64], strides = [1, 1]} : vector<16x320xf32> to vector<16x64xf32>
    %cst_160 = arith.constant dense<0.000000e+00> : vector<16x64xf32>
    %378 = tpu.matmul %24, %377, %cst_160 {dimension_numbers = #tpu.dot_dimension_numbers<[1], [0], [0], [1], [0, 0, 1, 1], [], []>} : vector<16x16xf32>, vector<16x64xf32>, vector<16x64xf32> -> vector<16x64xf32>
    %379 = arith.addf %376, %378 : vector<16x64xf32>
    %380 = vector.extract_strided_slice %367 {offsets = [0, 256], sizes = [16, 64], strides = [1, 1]} : vector<16x320xf32> to vector<16x64xf32>
    %cst_161 = arith.constant dense<0.000000e+00> : vector<16x64xf32>
    %381 = tpu.matmul %29, %380, %cst_161 {dimension_numbers = #tpu.dot_dimension_numbers<[1], [0], [0], [1], [0, 0, 1, 1], [], []>} : vector<16x16xf32>, vector<16x64xf32>, vector<16x64xf32> -> vector<16x64xf32>
    %382 = arith.addf %379, %381 : vector<16x64xf32>
    %383 = vector.broadcast %366 : vector<1x64xf32> to vector<16x64xf32>
    %384 = arith.addf %382, %383 : vector<16x64xf32>
    %cst_162 = arith.constant 0.000000e+00 : f32
    %385 = vector.broadcast %cst_162 : f32 to vector<16x64xf32>
    %386 = arith.maximumf %384, %385 : vector<16x64xf32>
    %c1_163 = arith.constant 1 : index
    %c0_164 = arith.constant 0 : index
    %c0_165 = arith.constant 0 : index
    %387 = vector.load %arg17[%c1_163, %c0_164, %c0_165] : memref<2x64x32xf32, #tpu.memory_space<vmem>>, vector<1x64x32xf32>
    %388 = vector.shape_cast %387 : vector<1x64x32xf32> to vector<64x32xf32>
    %c1_166 = arith.constant 1 : index
    %c0_167 = arith.constant 0 : index
    %c0_168 = arith.constant 0 : index
    %389 = vector.load %arg18[%c1_166, %c0_167, %c0_168] : memref<2x1x32xf32, #tpu.memory_space<vmem>>, vector<1x1x32xf32>
    %390 = vector.shape_cast %389 : vector<1x1x32xf32> to vector<1x32xf32>
    %cst_169 = arith.constant dense<0.000000e+00> : vector<16x32xf32>
    %391 = tpu.matmul %386, %388, %cst_169 {dimension_numbers = #tpu.dot_dimension_numbers<[1], [0], [0], [1], [0, 0, 1, 1], [], []>} : vector<16x64xf32>, vector<64x32xf32>, vector<16x32xf32> -> vector<16x32xf32>
    %392 = vector.broadcast %390 : vector<1x32xf32> to vector<16x32xf32>
    %393 = arith.addf %391, %392 : vector<16x32xf32>
    %394 = arith.addf %393, %362 : vector<16x32xf32>
    %c1_170 = arith.constant 1 : index
    %c0_171 = arith.constant 0 : index
    %c0_172 = arith.constant 0 : index
    %395 = vector.load %arg19[%c1_170, %c0_171, %c0_172] : memref<2x16x64xf32, #tpu.memory_space<vmem>>, vector<1x16x64xf32>
    %396 = vector.shape_cast %395 : vector<1x16x64xf32> to vector<16x64xf32>
    %cst_173 = arith.constant dense<0.000000e+00> : vector<1x64xf32>
    %397 = tpu.matmul %7, %396, %cst_173 {dimension_numbers = #tpu.dot_dimension_numbers<[1], [0], [0], [1], [0, 0, 1, 1], [], []>} : vector<1x16xf32>, vector<16x64xf32>, vector<1x64xf32> -> vector<1x64xf32>
    %c1_174 = arith.constant 1 : index
    %c0_175 = arith.constant 0 : index
    %c0_176 = arith.constant 0 : index
    %398 = vector.load %arg20[%c1_174, %c0_175, %c0_176] : memref<2x1x64xf32, #tpu.memory_space<vmem>>, vector<1x1x64xf32>
    %399 = vector.shape_cast %398 : vector<1x1x64xf32> to vector<1x64xf32>
    %400 = arith.addf %397, %399 : vector<1x64xf32>
    %cst_177 = arith.constant dense<0.000000e+00> : vector<16xf32>
    %401 = vector.multi_reduction <add>, %394, %cst_177 [1] : vector<16x32xf32> to vector<16xf32>
    %402 = vector.shape_cast %401 : vector<16xf32> to vector<16x1xf32>
    %cst_178 = arith.constant 3.200000e+01 : f32
    %403 = vector.broadcast %cst_178 : f32 to vector<16x1xf32>
    %404 = arith.divf %402, %403 : vector<16x1xf32>
    %405 = vector.broadcast %404 : vector<16x1xf32> to vector<16x32xf32>
    %406 = arith.subf %394, %405 : vector<16x32xf32>
    %407 = arith.mulf %406, %406 : vector<16x32xf32>
    %cst_179 = arith.constant dense<0.000000e+00> : vector<16xf32>
    %408 = vector.multi_reduction <add>, %407, %cst_179 [1] : vector<16x32xf32> to vector<16xf32>
    %409 = vector.shape_cast %408 : vector<16xf32> to vector<16x1xf32>
    %cst_180 = arith.constant 3.100000e+01 : f32
    %410 = vector.broadcast %cst_180 : f32 to vector<16x1xf32>
    %411 = arith.divf %409, %410 : vector<16x1xf32>
    %412 = vector.broadcast %404 : vector<16x1xf32> to vector<16x32xf32>
    %413 = arith.subf %394, %412 : vector<16x32xf32>
    %cst_181 = arith.constant 9.99999997E-7 : f32
    %414 = vector.broadcast %cst_181 : f32 to vector<16x1xf32>
    %415 = arith.addf %411, %414 : vector<16x1xf32>
    %416 = math.rsqrt %415 : vector<16x1xf32>
    %417 = vector.broadcast %416 : vector<16x1xf32> to vector<16x32xf32>
    %418 = arith.mulf %413, %417 : vector<16x32xf32>
    %419 = vector.extract_strided_slice %400 {offsets = [0, 0], sizes = [1, 32], strides = [1, 1]} : vector<1x64xf32> to vector<1x32xf32>
    %420 = vector.extract_strided_slice %400 {offsets = [0, 32], sizes = [1, 32], strides = [1, 1]} : vector<1x64xf32> to vector<1x32xf32>
    %cst_182 = arith.constant 0.000000e+00 : f32
    %421 = vector.broadcast %cst_182 : f32 to vector<16x1xf32>
    %422 = arith.cmpf ogt, %3, %421 : vector<16x1xf32>
    %423 = vector.broadcast %420 : vector<1x32xf32> to vector<16x32xf32>
    %424 = arith.mulf %423, %418 : vector<16x32xf32>
    %425 = vector.broadcast %419 : vector<1x32xf32> to vector<16x32xf32>
    %426 = arith.addf %424, %425 : vector<16x32xf32>
    %cst_183 = arith.constant 0.000000e+00 : f32
    %427 = vector.shape_cast %422 : vector<16x1xi1> to vector<16x1xi1>
    %428 = vector.broadcast %427 : vector<16x1xi1> to vector<16x32xi1>
    %429 = vector.broadcast %cst_183 : f32 to vector<16x32xf32>
    %430 = arith.select %428, %429, %426 : vector<16x32xi1>, vector<16x32xf32>
    %c0_184 = arith.constant 0 : index
    %c0_185 = arith.constant 0 : index
    %c0_186 = arith.constant 0 : index
    %431 = vector.load %arg21[%c0_184, %c0_185, %c0_186] : memref<1x16x32xf32, #tpu.memory_space<vmem>>, vector<1x16x32xf32>
    %432 = vector.shape_cast %431 : vector<1x16x32xf32> to vector<16x32xf32>
    %433 = vector.shape_cast %430 : vector<16x32xf32> to vector<1x16x32xf32>
    tpu.vector_store %arg21[%c0_184, %c0_185, %c0_186], %433 {strides = array<i32>} : memref<1x16x32xf32, #tpu.memory_space<vmem>>, vector<1x16x32xf32>,
    return
  }
  func.func @transform_0(%arg0: i32) -> (i32, i32, i32) {
    %c0_i32 = arith.constant 0 : i32
    %c0_i32_0 = arith.constant 0 : i32
    %c0_i32_1 = arith.constant 0 : i32
    return %arg0, %c0_i32, %c0_i32_0 : i32, i32, i32
  }
  func.func @transform_1(%arg0: i32) -> (i32, i32, i32) {
    %c0_i32 = arith.constant 0 : i32
    %c0_i32_0 = arith.constant 0 : i32
    %c0_i32_1 = arith.constant 0 : i32
    return %arg0, %c0_i32, %c0_i32_0 : i32, i32, i32
  }
  func.func @transform_2(%arg0: i32) -> (i32, i32, i32) {
    %c0_i32 = arith.constant 0 : i32
    %c0_i32_0 = arith.constant 0 : i32
    %c0_i32_1 = arith.constant 0 : i32
    return %arg0, %c0_i32, %c0_i32_0 : i32, i32, i32
  }
  func.func @transform_3(%arg0: i32) -> (i32, i32, i32) {
    %c0_i32 = arith.constant 0 : i32
    %c0_i32_0 = arith.constant 0 : i32
    %c0_i32_1 = arith.constant 0 : i32
    return %arg0, %c0_i32, %c0_i32_0 : i32, i32, i32
  }
  func.func @transform_4(%arg0: i32) -> (i32, i32) {
    %c0_i32 = arith.constant 0 : i32
    %c0_i32_0 = arith.constant 0 : i32
    %c0_i32_1 = arith.constant 0 : i32
    return %c0_i32, %c0_i32_0 : i32, i32
  }
  func.func @transform_5(%arg0: i32) -> (i32, i32) {
    %c0_i32 = arith.constant 0 : i32
    %c0_i32_0 = arith.constant 0 : i32
    %c0_i32_1 = arith.constant 0 : i32
    return %c0_i32, %c0_i32_0 : i32, i32
  }
  func.func @transform_6(%arg0: i32) -> (i32, i32) {
    %c0_i32 = arith.constant 0 : i32
    %c0_i32_0 = arith.constant 0 : i32
    %c0_i32_1 = arith.constant 0 : i32
    return %c0_i32, %c0_i32_0 : i32, i32
  }
  func.func @transform_7(%arg0: i32) -> (i32, i32) {
    %c0_i32 = arith.constant 0 : i32
    %c0_i32_0 = arith.constant 0 : i32
    %c0_i32_1 = arith.constant 0 : i32
    return %c0_i32, %c0_i32_0 : i32, i32
  }
  func.func @transform_8(%arg0: i32) -> (i32, i32) {
    %c0_i32 = arith.constant 0 : i32
    %c0_i32_0 = arith.constant 0 : i32
    %c0_i32_1 = arith.constant 0 : i32
    return %c0_i32, %c0_i32_0 : i32, i32
  }
  func.func @transform_9(%arg0: i32) -> (i32, i32) {
    %c0_i32 = arith.constant 0 : i32
    %c0_i32_0 = arith.constant 0 : i32
    %c0_i32_1 = arith.constant 0 : i32
    return %c0_i32, %c0_i32_0 : i32, i32
  }
  func.func @transform_10(%arg0: i32) -> (i32, i32, i32) {
    %c0_i32 = arith.constant 0 : i32
    %c0_i32_0 = arith.constant 0 : i32
    %c0_i32_1 = arith.constant 0 : i32
    %c0_i32_2 = arith.constant 0 : i32
    return %c0_i32, %c0_i32_0, %c0_i32_1 : i32, i32, i32
  }
  func.func @transform_11(%arg0: i32) -> (i32, i32, i32) {
    %c0_i32 = arith.constant 0 : i32
    %c0_i32_0 = arith.constant 0 : i32
    %c0_i32_1 = arith.constant 0 : i32
    %c0_i32_2 = arith.constant 0 : i32
    return %c0_i32, %c0_i32_0, %c0_i32_1 : i32, i32, i32
  }
  func.func @transform_12(%arg0: i32) -> (i32, i32, i32) {
    %c0_i32 = arith.constant 0 : i32
    %c0_i32_0 = arith.constant 0 : i32
    %c0_i32_1 = arith.constant 0 : i32
    %c0_i32_2 = arith.constant 0 : i32
    return %c0_i32, %c0_i32_0, %c0_i32_1 : i32, i32, i32
  }
  func.func @transform_13(%arg0: i32) -> (i32, i32, i32) {
    %c0_i32 = arith.constant 0 : i32
    %c0_i32_0 = arith.constant 0 : i32
    %c0_i32_1 = arith.constant 0 : i32
    %c0_i32_2 = arith.constant 0 : i32
    return %c0_i32, %c0_i32_0, %c0_i32_1 : i32, i32, i32
  }
  func.func @transform_14(%arg0: i32) -> (i32, i32, i32) {
    %c0_i32 = arith.constant 0 : i32
    %c0_i32_0 = arith.constant 0 : i32
    %c0_i32_1 = arith.constant 0 : i32
    %c0_i32_2 = arith.constant 0 : i32
    return %c0_i32, %c0_i32_0, %c0_i32_1 : i32, i32, i32
  }
  func.func @transform_15(%arg0: i32) -> (i32, i32, i32) {
    %c0_i32 = arith.constant 0 : i32
    %c0_i32_0 = arith.constant 0 : i32
    %c0_i32_1 = arith.constant 0 : i32
    %c0_i32_2 = arith.constant 0 : i32
    return %c0_i32, %c0_i32_0, %c0_i32_1 : i32, i32, i32
  }
  func.func @transform_16(%arg0: i32) -> (i32, i32, i32) {
    %c0_i32 = arith.constant 0 : i32
    %c0_i32_0 = arith.constant 0 : i32
    %c0_i32_1 = arith.constant 0 : i32
    %c0_i32_2 = arith.constant 0 : i32
    return %c0_i32, %c0_i32_0, %c0_i32_1 : i32, i32, i32
  }
  func.func @transform_17(%arg0: i32) -> (i32, i32, i32) {
    %c0_i32 = arith.constant 0 : i32
    %c0_i32_0 = arith.constant 0 : i32
    %c0_i32_1 = arith.constant 0 : i32
    %c0_i32_2 = arith.constant 0 : i32
    return %c0_i32, %c0_i32_0, %c0_i32_1 : i32, i32, i32
  }
  func.func @transform_18(%arg0: i32) -> (i32, i32, i32) {
    %c0_i32 = arith.constant 0 : i32
    %c0_i32_0 = arith.constant 0 : i32
    %c0_i32_1 = arith.constant 0 : i32
    %c0_i32_2 = arith.constant 0 : i32
    return %c0_i32, %c0_i32_0, %c0_i32_1 : i32, i32, i32
  }
  func.func @transform_19(%arg0: i32) -> (i32, i32, i32) {
    %c0_i32 = arith.constant 0 : i32
    %c0_i32_0 = arith.constant 0 : i32
    %c0_i32_1 = arith.constant 0 : i32
    %c0_i32_2 = arith.constant 0 : i32
    return %c0_i32, %c0_i32_0, %c0_i32_1 : i32, i32, i32
  }
  func.func @transform_20(%arg0: i32) -> (i32, i32, i32) {
    %c0_i32 = arith.constant 0 : i32
    %c0_i32_0 = arith.constant 0 : i32
    %c0_i32_1 = arith.constant 0 : i32
    return %arg0, %c0_i32, %c0_i32_0 : i32, i32, i32
  }
}

</mosaic_0001>

<bundles_post_ra>
// kernel: phoneme_encoder_forward.1
= control target key start
LH: loop header
LB: loop body
LE: loop exit
PB: predicated region body
PF: predicated region fallthrough
CT: control target
= control target key end

     0   :  { %s6643_s0 = inlined_call_operand.vmem [shape: f32[2,16,32], index: 0, kind: input, shape index: {}]   ;;  %s6644_s1 = inlined_call_operand.vmem [shape: f32[2,16,1], index: 1, kind: input, shape index: {}]   ;;  %s6645_s2 = inlined_call_operand.vmem [shape: f32[2,1,16], index: 2, kind: input, shape index: {}]   ;;  %s6646_s3 = inlined_call_operand.vmem [shape: f32[2,1,16], index: 3, kind: input, shape index: {}]   ;;  %s6647_s4 = inlined_call_operand.vmem [shape: f32[16,32], index: 4, kind: input, shape index: {}]   ;;  %s6648_s5 = inlined_call_operand.vmem [shape: f32[32,96], index: 5, kind: input, shape index: {}]   ;;  %s6649_s6 = inlined_call_operand.vmem [shape: f32[1,32], index: 6, kind: input, shape index: {}]   ;;  %s6650_s7 = inlined_call_operand.vmem [shape: f32[32,96], index: 7, kind: input, shape index: {}]   ;;  %s6651_s8 = inlined_call_operand.vmem [shape: f32[1,32], index: 8, kind: input, shape index: {}]   ;;  %s6652_s9 = inlined_call_operand.vmem [shape: f32[32,32], index: 9, kind: input, shape index: {}]   ;;  %s6653_s10 = inlined_call_operand.vmem [shape: f32[2,32,96], index: 10, kind: input, shape index: {}]   ;;  %s6654_s11 = inlined_call_operand.vmem [shape: f32[2,32,32], index: 11, kind: input, shape index: {}]   ;;  %s6655_s12 = inlined_call_operand.vmem [shape: f32[2,16,64], index: 12, kind: input, shape index: {}]   ;;  %s6656_s13 = inlined_call_operand.vmem [shape: f32[2,1,64], index: 13, kind: input, shape index: {}]   ;;  %s6657_s14 = inlined_call_operand.vmem [shape: f32[2,32,320], index: 14, kind: input, shape index: {}]   ;;  %s6658_s15 = inlined_call_operand.vmem [shape: f32[2,1,64], index: 15, kind: input, shape index: {}]   ;;  %s6659_s16 = inlined_call_operand.vmem [shape: f32[2,64,32], index: 16, kind: input, shape index: {}]   ;;  %s6660_s17 = inlined_call_operand.vmem [shape: f32[2,1,32], index: 17, kind: input, shape index: {}]   ;;  %s6661_s18 = inlined_call_operand.vmem [shape: f32[2,16,64], index: 18, kind: input, shape index: {}]   ;;  %s6662_s19 = inlined_call_operand.vmem [shape: f32[2,1,64], index: 19, kind: input, shape index: {}]   ;;  %s6663_s20 = inlined_call_operand.hbm [shape: f32[2,16,32], index: 20, kind: output, shape index: {}]  }
   0x1   :  { %6681 = sst [smem:[#allocation9_spill]] %s6643_s0 }
   0x2   :  { %6682 = sst [smem:[#allocation10_spill]] %s6644_s1 }
   0x3   :  { %6683 = sst [smem:[#allocation11_spill]] %s6645_s2 }
   0x4   :  { %6684 = sst [smem:[#allocation12_spill]] %s6646_s3 }
   0x5   :  { %6685 = sst [smem:[#allocation13_spill]] %s6647_s4 }
   0x6   :  { %6686 = sst [smem:[#allocation14_spill]] %s6648_s5 }
   0x7   :  { %6687 = sst [smem:[#allocation15_spill]] %s6649_s6 }
   0x8   :  { %6688 = sst [smem:[#allocation16_spill]] %s6650_s7 }
   0x9   :  { %6689 = sst [smem:[#allocation17_spill]] %s6651_s8 }
   0xa   :  { %6690 = sst [smem:[#allocation18_spill]] %s6652_s9 }
   0xb   :  { %25 = vsyncpa [#allocation3], 0 }
   0xc   :  { %27 = vsyncpa [#allocation3 + $0x1], 0  ;;  %s5867_s1 = smov 0   ;;  %s5869_s22 = smov 0  }
   0xd   :  { %s5871_s23 = smov 0   ;;  %s5873_s24 = smov 0  }
   0xe LB: > { %6691 = sst [smem:[#allocation5_spill]] %s5743_s23  ;;  %s5888_s2 = sadd.s32 4294967295, %s5747_s24   ;;  %s5747_s24 = sphi %s5873_s24, %s6719_s24   ;;  %s5743_s23 = sphi %s5871_s23, %s6721_s23   ;;  %s5739_s22 = sphi %s5869_s22, %s6723_s22   ;;  %s5735_s1 = sphi %s5867_s1, %s6722_s1  }
   0xf   : > { %s4611_s25 = sadd.s32 4294967294, %s5747_s24   ;;  %s5892_s3 = sadd.s32 1, %s5747_s24  }
  0x10   : > { %6692 = sst [smem:[#allocation6_spill]] %s5892_s3  ;;  %s480_s26 = sadd.s32 1, %s5743_s23 }
  0x11   : > { %s477_s27 = ssub.s32 %s5747_s24, %s5892_s3  ;;  %p490_p0 = scmp.ne.s32.totalorder %s5743_s23, %s5739_s22 }
  0x12   : > { %p478_p1 = scmp.eq.s32.totalorder %s477_s27, 0  ;;  %p491_p2 = scmp.eq.s32.totalorder %s5888_s2, 1 }
  0x13   : > { %p496_p3 = scmp.ne.s32.totalorder %s5739_s22, %s5735_s1  ;;  %p497_p4 = scmp.eq.s32.totalorder %s4611_s25, 1 }
  0x14   : > { %s5903_s28 = scalar_select %p478_p1, %s5743_s23, %s480_s26  }
  0x15   : > { %p5905_p5 = por %p491_p2, %p490_p0  ;;  %p5909_p6 = por %p497_p4, %p496_p3 }
  0x16   : > { %6693 = sst [smem:[#allocation7_spill]] %s5903_s28  ;;  %p4614_p7 = scmp.ge.s32.totalorder %s5747_s24, 1 }
  0x17   : > { %s6695_s29 = scalar_select %p5909_p6, 1, 0 }
  0x18   : > { %p591_p8 = scmp.lt.s32.totalorder %s5747_s24, 3 }
  0x19   : > { %6696 = sst [smem:[#allocation8_spill]] %s6695_s29 }
  0x1a   : > { %p592_p9 = pnand %p4614_p7, %p591_p8 }
  0x1b   : > { %s6697_s5 = sld [smem:[#allocation14_spill]] (!%p592_p9)  ;;  %p660_p10 = scmp.lt.s32.totalorder (!%p592_p9), %s5888_s2, 1  ;;  %vm724_vm0 = vcmask (!%p592_p9), 261120   ;;  %v682_v8 = vlaneseq (!%p592_p9)  ;;  %vm814_vm1 = vcmask (!%p592_p9), 130048   ;;  %v5749_v12 = vmov (!%p592_p9), 0.0  }
  0x1c   : > { %595 = sbr.rel (%p592_p9) target bundleno = 8451 (0x2103), region = 100  ;;  %s6698_s25 = sld [smem:[#allocation9_spill]] (!%p592_p9) }
  0x1d   : > { %v5945_v9 = vshrl.u32 (!%p592_p9), %v682_v8, 7  ;;  %v5947_v10 = vand.u32 (!%p592_p9), 127, %v682_v8  ;;  %s6671_s23 = smov (!%p592_p9), 96   ;;  %s6669_s28 = smov (!%p592_p9), 64  }
  0x1e   : > { %s6699_s7 = sld [smem:[#allocation16_spill]] (!%p592_p9)  ;;  %s6700_s6 = sld [smem:[#allocation15_spill]] (!%p592_p9) }
  0x1f   : > { %v695_v11 = vadd.s32 (!%p592_p9), 4294967295, %v5945_v9  ;;  %v5957_v14 = vadd.s32 (!%p592_p9), 8, %v5945_v9  ;;  %v703_v16 = vadd.s32 (!%p592_p9), 1, %v5945_v9  ;;  %s6703_s9 = sld [smem:[#allocation18_spill]] (!%p592_p9)  ;;  %s6706_s8 = sld [smem:[#allocation17_spill]] (!%p592_p9) }
  0x20   : > { %s6705_s29 = sld [smem:[#allocation10_spill]] (!%p592_p9)  ;;  %s6678_s27 = smov (!%p592_p9), 32  }
  0x21   : > { %v719_v0 = vld [vmem:[%s6697_s5] sm:$0xff] (!%p592_p9)  ;;  %v720_v1 = vld [vmem:[%s6697_s5 + $0x8] sm:$0xff] (!%p592_p9)  ;;  %v721_v2 = vld [vmem:[%s6697_s5 + $0x10] sm:$0xff] (!%p592_p9)  ;;  %vm697_vm2 = vcmp.eq.s32.totalorder (!%p592_p9), %v5947_v10, %v695_v11  ;;  %v696_v15 = vadd.s32 (!%p592_p9), 4294967295, %v5957_v14  ;;  %vm705_vm4 = vcmp.eq.s32.totalorder (!%p592_p9), %v5947_v10, %v703_v16  ;;  %v704_v23 = vadd.s32 (!%p592_p9), 1, %v5957_v14  ;;  %s6714_s0 = smov (!%p592_p9), 32  }
  0x22   : > { %v5241_v3 = vpack.c.bf16 (!%p592_p9), %v720_v1, %v719_v0  ;;  %v722_v4 = vld [vmem:[%s6697_s5 + $0x18] sm:$0xff] (!%p592_p9)  ;;  %v5952_v13 = vsel (!%p592_p9), %vm697_vm2, 1.0, %v5749_v12  ;;  %v5969_v22 = vsel (!%p592_p9), %vm705_vm4, 1.0, %v5749_v12  ;;  %vm6082_vm4 = vmpackc.low (!%p592_p9), %vm814_vm1, %vm814_vm1  ;;  %s6677_s5 = smov (!%p592_p9), 80  }
  0x23   : > { %v5245_v5 = vpack.c.bf16 %v722_v4, %v721_v2  ;;  %s5929_s3 = scalar_select %p660_p10, %s5888_s2, 1  ;;  %4945 = vmatprep.mubr.msk.f32.mxu1 %vm814_vm1, %v5952_v13  ;;  %vm698_vm3 = vcmp.eq.s32.totalorder %v5947_v10, %v696_v15  ;;  %vm706_vm5 = vcmp.eq.s32.totalorder %v5947_v10, %v704_v23 }
  0x24   : > { %5242 = vmatprep.subr.bf16.mxu0 %v5241_v3  ;;  %v5966_v21 = vsel %vm698_vm3, 1.0, %v5749_v12  ;;  %v5979_v28 = vsel %vm706_vm5, 1.0, %v5749_v12  ;;  %v1033_v29 = vld [vmem:[%s6699_s7] sm:$0xff]  ;;  %v1034_v30 = vld [vmem:[%s6699_s7 + $0x8] sm:$0xff]  ;;  %v1035_v31 = vld [vmem:[%s6699_s7 + $0x10] sm:$0xff] }
  0x25   : > { %5244 = vmatpush3.bf16.msra.mxu0 %v5241_v3  ;;  %s6668_s30 = sshll.u32 %s5929_s3, 4  ;;  %v5257_v32 = vpack.c.bf16 %v1034_v30, %v1033_v29  ;;  %v1036_v33 = vld [vmem:[%s6699_s7 + $0x18] sm:$0xff]  ;;  %v4634_v36 = vld [vmem:[%s6700_s6] ss:$0 sm:$0xff]  ;;  %s6707_s7 = sld [smem:[#allocation13_spill]] }
  0x26   : > { %5246 = vmatprep.subr.bf16.mxu0 %v5245_v5  ;;  %s664_s26 = scalar_lea.vmem %s6698_s25, %s6668_s30  ;;  %v5261_v34 = vpack.c.bf16 %v1036_v33, %v1035_v31  ;;  %s6701_s30 = smov 96   ;;  %v1334_v33 = vld [vmem:[%s6703_s9 + $0x8] sm:$0xff] }
  0x27   : > { %v5937_v6 = vld [vmem:[%s664_s26] sm:$0xff]  ;;  %v5941_v7 = vld [vmem:[%s664_s26 + $0x8] sm:$0xff]  ;;  %s6674_s6 = smov 48   ;;  %s4759_s26 = sshll.u32 %s5888_s2, 8 }
  0x28   : > { %4938 = vmatprep.mubr.msk.f32.mxu0 %vm724_vm0, %v5937_v6  ;;  %s5759_s2 = smov [#allocation2]  }
  0x29   : > { %5248 = vmatpush3.bf16.msra.mxu0 %v5245_v5 }
  0x2a   : > { %5258 = vmatprep.subr.bf16.mxu0 %v5257_v32 }
  0x2c   : > { %4939 = vmatmul.mubr.msk.f32.vlgmr.msra.gmra.mrb[0].mxu0 %vm724_vm0, %v5941_v7 }
  0x2d   : > { %5260 = vmatpush3.bf16.msra.mxu0 %v5257_v32  ;;  %v1333_v32 = vld [vmem:[%s6703_s9] sm:$0xff] }
  0x2e   : > { %5262 = vmatprep.subr.bf16.mxu0 %v5261_v34 }
  0x31   : > { %5264 = vmatpush3.bf16.msra.mxu0 %v5261_v34  ;;  %v1335_v34 = vld [vmem:[%s6703_s9 + $0x10] sm:$0xff] }
  0xff   : > { %v4940_v17 = vpop.f32.mrb[0].mxu0 }
 0x100   : > { %810 = vrot.lane.b32.xlu1 %v4940_v17, %s6671_s23  ;;  %v797_v18 = vpop.f32.mrb[1].mxu0 }
 0x101   : > { %v5540_v19 = vpack.i.bf16 %v4940_v17, %v797_v18  ;;  %v5249_v20 = vpack.c.bf16 %v4940_v17, %v797_v18 }
 0x103   : > { %5541 = vrot.lane.b32.xlu0 %v5540_v19, %s6669_s28  ;;  %5250 = vmatprep.subr.bf16.mxu1 %v5249_v20  ;;  %s6704_s28 = sshll.u32 %s5929_s3, 4 }
 0x104   : > { %5252 = vmatpush3.bf16.msra.mxu1 %v5249_v20  ;;  %s669_s25 = scalar_lea.vmem %s6705_s29, %s6704_s28  ;;  %s6710_s28 = sld [smem:[#allocation11_spill]] }
 0x105   : > { %s6717_s29 = smov 48  }
 0x107   : > { %808 = vrot.lane.b32.xlu0 %v797_v18, %s6671_s23  ;;  %4946 = vmatmul.mubr.msk.f32.vlgmr.msra.gmra.mrb[0].mxu1 %vm814_vm1, %v5966_v21  ;;  %s6702_s23 = smov 64  }
 0x108   : > { %4952 = vmatprep.mubr.msk.f32.mxu1 %vm814_vm1, %v5969_v22 }
 0x10a   : > { %s672_s21 = scalar_lea.vmem %s6710_s28, %s5929_s3 }
 0x172   : > { %v811_v35 = vpop.permute.xlu1 %810 }
 0x175   : > { %v5542_v24 = vpop.permute.xlu0 %5541 }
 0x176   : > { %v5544_v25 = vunpack.i.h.bf16 %v5542_v24  ;;  %v5543_v26 = vunpack.i.l.bf16 %v5542_v24 }
 0x178   : > { %v5253_v27 = vpack.c.bf16 %v5544_v25, %v5543_v26 }
 0x179   : > { %v809_v38 = vpop.permute.xlu0 %808 }
 0x17a   : > { %5254 = vmatprep.subr.bf16.mxu1 %v5253_v27 }
 0x17b   : > { %5256 = vmatpush3.bf16.msra.mxu1 %v5253_v27 }
 0x17e   : > { %4953 = vmatmul.mubr.msk.f32.vlgmr.msra.gmra.mrb[0].mxu1 %vm814_vm1, %v5979_v28 }
 0x17f   : > { %4970 = vmatprep.mubr.msk.f32.mxu1 %vm814_vm1, %v5952_v13 }
 0x251   : > { %v4954_v37 = vpop.f32.mrb[0].mxu1 }
 0x252   : > { %v5461_v39 = vadd.f32 %v4954_v37, %v811_v35  ;;  %v974_v40 = vpop.f32.mrb[1].mxu1  ;;  %v5273_v35 = vpack.c.bf16 %v1334_v33, %v1333_v32  ;;  %v1438_v32 = vld [vmem:[%s6653_s10] sm:$0xff]  ;;  %v1439_v33 = vld [vmem:[%s6653_s10 + $0x8] sm:$0xff] }
 0x253   : > { %v5462_v41 = vadd.f32 %v974_v40, %v809_v38  ;;  %v679_v38 = vld [vmem:[%s669_s25 + $0x8] sm:$0xff]  ;;  %v5752_v40 = vmov 0  }
 0x254   : > { %v992_v42 = vadd.f32 %v5461_v39, %v4634_v36  ;;  %5274 = vmatprep.subr.bf16.mxu0 %v5273_v35  ;;  %v678_v39 = vld [vmem:[%s669_s25] sm:$0xff]  ;;  %5551 = vset.pattern.permute.xlu1 %v5752_v40  ;;  %vm1419_vm10 = vcmp.gt.f32.partialorder %v679_v38, 0.0  ;;  %s6675_s25 = smov 112  }
 0x255   : > { %v991_v43 = vadd.f32 %v5462_v41, %v4634_v36  ;;  %v1336_v36 = vld [vmem:[%s6703_s9 + $0x18] sm:$0xff]  ;;  %5550 = vset.pattern.permute.xlu0 %v5752_v40  ;;  %vm1418_vm11 = vcmp.gt.f32.partialorder %v678_v39, 0.0  ;;  %v1421_v41 = vsel %vm1419_vm10, 1, %v5752_v40  ;;  %s6598_s9 = scalar_lea.hbm %s6663_s20, %s4759_s26 }
 0x256   : > { %v1000_v44 = vand.u32 2147483647, %v992_v42  ;;  %v994_v0 = vmax.f32 %v992_v42, 0.0  ;;  %vm996_vm8 = vcmp.ne.f32.partialorder %v992_v42, %v992_v42  ;;  %v5277_v37 = vpack.c.bf16 %v1336_v36, %v1335_v34  ;;  %v1441_v36 = vld [vmem:[%s6653_s10 + $0x18] sm:$0xff] }
 0x257   : > { %v999_v45 = vand.u32 2147483647, %v991_v43  ;;  %v993_v4 = vmax.f32 %v991_v43, 0.0  ;;  %vm995_vm9 = vcmp.ne.f32.partialorder %v991_v43, %v991_v43  ;;  %v5281_v34 = vpack.c.bf16 %v1439_v33, %v1438_v32 }
 0x258   : > { %v1002_v46 = vsub.f32 0.0, %v1000_v44  ;;  %v4641_v44 = vld [vmem:[%s6706_s8] ss:$0 sm:$0xff]  ;;  %s6715_s8 = smov 80  }
 0x259   : > { %v1001_v47 = vsub.f32 0.0, %v999_v45 }
 0x25a   : > { %v1005_v48 = vmul.f32 1.442695, %v1002_v46 }
 0x25b   : > { %v1003_v49 = vmul.f32 1.442695, %v1001_v47 }
 0x25c   : > { %5612 = vpow2.f32 %v1005_v48 }
 0x25d   : > { %5614 = vpow2.f32 %v1003_v49 }
 0x266   : > { %v5613_v50 = vpop.eup %5612 }
 0x267   : > { %v5615_v51 = vpop.eup %5614  ;;  %v1016_v52 = vadd.f32 1.0, %v5613_v50  ;;  %v1019_v54 = vmul.f32 -0.5, %v5613_v50  ;;  %v1022_v57 = vand.u32 2147483647, %v5613_v50 }
 0x268   : > { %v1007_v53 = vadd.f32 1.0, %v5615_v51  ;;  %v1010_v55 = vmul.f32 -0.5, %v5615_v51  ;;  %v1013_v59 = vand.u32 2147483647, %v5615_v51 }
 0x269   : > { %5616 = vlog2.f32 %v1016_v52  ;;  %v1020_v56 = vadd.f32 1.0, %v1019_v54  ;;  %vm1023_vm6 = vcmp.lt.f32.partialorder %v1022_v57, 0.0004427343 }
 0x26a   : > { %5618 = vlog2.f32 %v1007_v53  ;;  %v1011_v58 = vadd.f32 1.0, %v1010_v55  ;;  %vm1014_vm7 = vcmp.lt.f32.partialorder %v1013_v59, 0.0004427343 }
 0x26b   : > { %v1021_v63 = vmul.f32 %v5613_v50, %v1020_v56 }
 0x26c   : > { %v1012_v2 = vmul.f32 %v5615_v51, %v1011_v58 }
 0x273   : > { %v5617_v60 = vpop.eup %5616 }
 0x274   : > { %v5619_v61 = vpop.eup %5618  ;;  %v1018_v62 = vmul.f32 0.6931472, %v5617_v60 }
 0x275   : > { %v1009_v1 = vmul.f32 0.6931472, %v5619_v61 }
 0x276   : > { %v1024_v3 = vsel %vm1023_vm6, %v1021_v63, %v1018_v62 }
 0x277   : > { %v1026_v5 = vadd.f32 %v1024_v3, %v994_v0  ;;  %v1015_v8 = vsel %vm1014_vm7, %v1012_v2, %v1009_v1  ;;  %vm5757_vm7 = vmmov 0  }
 0x278   : > { %v1025_v11 = vadd.f32 %v1015_v8, %v993_v4 }
 0x279   : > { %v1028_v15 = vsel %vm996_vm8, %v992_v42, %v1026_v5 }
 0x27a   : > { %5620 = vtanh.f32 %v1028_v15  ;;  %v1027_v16 = vsel %vm995_vm9, %v991_v43, %v1025_v11 }
 0x27b   : > { %5622 = vtanh.f32 %v1027_v16 }
 0x284   : > { %v5621_v17 = vpop.eup %5620 }
 0x285   : > { %v5623_v18 = vpop.eup %5622  ;;  %v1032_v20 = vmul.f32 %v5621_v17, %v992_v42  ;;  %v1420_v42 = vsel %vm1418_vm11, 1, %v5752_v40 }
 0x286   : > { %v1031_v19 = vmul.f32 %v5623_v18, %v991_v43 }
 0x288   : > { %4963 = vmatprep.mubr.msk.f32.mxu0 %vm724_vm0, %v1031_v19 }
 0x289   : > { %4964 = vmatmul.mubr.msk.f32.vlgmr.msra.gmra.mrb[2].mxu0 %vm724_vm0, %v1032_v20 }
 0x28a   : > { %5276 = vmatpush3.bf16.msra.mxu0 %v5273_v35  ;;  %v1440_v35 = vld [vmem:[%s6653_s10 + $0x10] sm:$0xff] }
 0x28b   : > { %5278 = vmatprep.subr.bf16.mxu0 %v5277_v37 }
 0x28e   : > { %5280 = vmatpush3.bf16.msra.mxu0 %v5277_v37  ;;  %v5285_v37 = vpack.c.bf16 %v1441_v36, %v1440_v35 }
 0x35c   : > { %v4965_v23 = vpop.f32.mrb[2].mxu0 }
 0x35d   : > { %v1110_v24 = vpop.f32.mrb[3].mxu0 }
 0x35e   : > { %v5545_v25 = vpack.i.bf16 %v4965_v23, %v1110_v24  ;;  %v5265_v26 = vpack.c.bf16 %v4965_v23, %v1110_v24  ;;  %1121 = vrot.lane.b32.xlu0 %v1110_v24, %s6701_s30 }
 0x360   : > { %5546 = vrot.lane.b32.xlu1 %v5545_v25, %s6702_s23  ;;  %5266 = vmatprep.subr.bf16.mxu1 %v5265_v26 }
 0x361   : > { %5268 = vmatpush3.bf16.msra.mxu1 %v5265_v26 }
 0x362   : > { %1423 = vperm.xlu0 %5550, %v1420_v42  }
 0x364   : > { %1123 = vrot.lane.b32.xlu1 %v4965_v23, %s6701_s30  ;;  %4971 = vmatmul.mubr.msk.f32.vlgmr.msra.gmra.mrb[2].mxu1 %vm814_vm1, %v5966_v21 }
 0x365   : > { %4977 = vmatprep.mubr.msk.f32.mxu1 %vm814_vm1, %v5969_v22 }
 0x368   : > { %1426 = vperm.xlu1 %5551, %v1421_v41  }
 0x3d0   : > { %v1122_v46 = vpop.permute.xlu0 %1121 }
 0x3d2   : > { %v5547_v27 = vpop.permute.xlu1 %5546 }
 0x3d3   : > { %v5549_v29 = vunpack.i.h.bf16 %v5547_v27  ;;  %v5548_v30 = vunpack.i.l.bf16 %v5547_v27 }
 0x3d5   : > { %v5269_v31 = vpack.c.bf16 %v5549_v29, %v5548_v30 }
 0x3d6   : > { %v1124_v43 = vpop.permute.xlu1 %1123 }
 0x3d7   : > { %5270 = vmatprep.subr.bf16.mxu1 %v5269_v31 }
 0x3d8   : > { %5272 = vmatpush3.bf16.msra.mxu1 %v5269_v31 }
 0x3d9   : > { %5282 = vmatprep.subr.bf16.mxu1 %v5281_v34 }
 0x3db   : > { %4978 = vmatmul.mubr.msk.f32.vlgmr.msra.gmra.mrb[2].mxu1 %vm814_vm1, %v5979_v28 }
 0x3dc   : > { %5284 = vmatpush3.bf16.msra.mxu1 %v5281_v34 }
 0x3dd   : > { %5286 = vmatprep.subr.bf16.mxu1 %v5285_v37 }
 0x3e0   : > { %5288 = vmatpush3.bf16.msra.mxu1 %v5285_v37 }
 0x3e1   : > { %v6051_v39 = vpop.permute.xlu0 %1423 }
 0x3e2   : > { %vm1428_vm3 = vcmp.eq.s32.totalorder %v6051_v39, 1 }
 0x3e7   : > { %v6049_v38 = vpop.permute.xlu1 %1426 }
 0x3e8   : > { %vm1429_vm2 = vcmp.eq.s32.totalorder %v6049_v38, 1 }
 0x4ae   : > { %v4979_v45 = vpop.f32.mrb[2].mxu1 }
 0x4af   : > { %v5463_v47 = vadd.f32 %v4979_v45, %v1124_v43  ;;  %v1274_v48 = vpop.f32.mrb[3].mxu1 }
 0x4b0   : > { %v5464_v49 = vadd.f32 %v1274_v48, %v1122_v46  ;;  %v1434_v46 = vld [vmem:[%s6707_s7] sm:$0xff] }
 0x4b1   : > { %v1292_v50 = vadd.f32 %v5463_v47, %v4641_v44  ;;  %v1435_v47 = vld [vmem:[%s6707_s7 + $0x8] sm:$0xff] }
 0x4b2   : > { %v1291_v51 = vadd.f32 %v5464_v49, %v4641_v44 }
 0x4b3   : > { %v1300_v52 = vand.u32 2147483647, %v1292_v50  ;;  %v1294_v15 = vmax.f32 %v1292_v50, 0.0  ;;  %vm1296_vm14 = vcmp.ne.f32.partialorder %v1292_v50, %v1292_v50 }
 0x4b4   : > { %v1299_v53 = vand.u32 2147483647, %v1291_v51  ;;  %v1293_v19 = vmax.f32 %v1291_v51, 0.0  ;;  %vm1295_vm15 = vcmp.ne.f32.partialorder %v1291_v51, %v1291_v51 }
 0x4b5   : > { %v1302_v54 = vsub.f32 0.0, %v1300_v52 }
 0x4b6   : > { %v1301_v55 = vsub.f32 0.0, %v1299_v53 }
 0x4b7   : > { %v1305_v56 = vmul.f32 1.442695, %v1302_v54 }
 0x4b8   : > { %v1303_v57 = vmul.f32 1.442695, %v1301_v55 }
 0x4b9   : > { %5624 = vpow2.f32 %v1305_v56 }
 0x4ba   : > { %5626 = vpow2.f32 %v1303_v57  ;;  %v680_v57 = vld [vmem:[%s672_s21] sm:$0x1]  ;;  %s6716_s21 = smov 112  }
 0x4bb   : > { %vm1618_vm5 = vcmp.gt.f32.partialorder %v680_v57, 0.0 }
 0x4c3   : > { %v5625_v58 = vpop.eup %5624 }
 0x4c4   : > { %v5627_v59 = vpop.eup %5626  ;;  %v1316_v60 = vadd.f32 1.0, %v5625_v58  ;;  %v1319_v62 = vmul.f32 -0.5, %v5625_v58  ;;  %v1322_v1 = vand.u32 2147483647, %v5625_v58 }
 0x4c5   : > { %v1307_v61 = vadd.f32 1.0, %v5627_v59  ;;  %v1310_v63 = vmul.f32 -0.5, %v5627_v59  ;;  %v1313_v3 = vand.u32 2147483647, %v5627_v59 }
 0x4c6   : > { %5628 = vlog2.f32 %v1316_v60  ;;  %v1320_v0 = vadd.f32 1.0, %v1319_v62  ;;  %vm1323_vm12 = vcmp.lt.f32.partialorder %v1322_v1, 0.0004427343 }
 0x4c7   : > { %5630 = vlog2.f32 %v1307_v61  ;;  %v1311_v2 = vadd.f32 1.0, %v1310_v63  ;;  %vm1314_vm13 = vcmp.lt.f32.partialorder %v1313_v3, 0.0004427343 }
 0x4c8   : > { %v1321_v11 = vmul.f32 %v5625_v58, %v1320_v0  ;;  %v6096_v58 = vsub.s32 0, %v5945_v9 }
 0x4c9   : > { %v1312_v17 = vmul.f32 %v5627_v59, %v1311_v2  ;;  %v1619_v59 = vsel %vm1618_vm5, 1, %v5752_v40 }
 0x4ca   : > { %v1623_v60 = vrot.slane %v1619_v59, %v6096_v58 }
 0x4cc   : > { %vm6100_vm6 = vcmp.eq.s32.totalorder %v1623_v60, 1 }
 0x4d0   : > { %v5629_v4 = vpop.eup %5628 }
 0x4d1   : > { %v5631_v5 = vpop.eup %5630  ;;  %v1318_v8 = vmul.f32 0.6931472, %v5629_v4 }
 0x4d2   : > { %v1309_v16 = vmul.f32 0.6931472, %v5631_v5 }
 0x4d3   : > { %v1324_v18 = vsel %vm1323_vm12, %v1321_v11, %v1318_v8  ;;  %vm2764_vm12 = vcmask 523264  }
 0x4d4   : > { %v1326_v20 = vadd.f32 %v1324_v18, %v1294_v15  ;;  %v1315_v23 = vsel %vm1314_vm13, %v1312_v17, %v1309_v16 }
 0x4d5   : > { %v1325_v24 = vadd.f32 %v1315_v23, %v1293_v19 }
 0x4d6   : > { %v1328_v25 = vsel %vm1296_vm14, %v1292_v50, %v1326_v20 }
 0x4d7   : > { %5632 = vtanh.f32 %v1328_v25  ;;  %v1327_v26 = vsel %vm1295_vm15, %v1291_v51, %v1325_v24 }
 0x4d8   : > { %5634 = vtanh.f32 %v1327_v26 }
 0x4e1   : > { %v5633_v27 = vpop.eup %5632 }
 0x4e2   : > { %v5635_v29 = vpop.eup %5634  ;;  %v1332_v31 = vmul.f32 %v5633_v27, %v1292_v50 }
 0x4e3   : > { %v1331_v30 = vmul.f32 %v5635_v29, %v1291_v51 }
 0x4e5   : > { %4988 = vmatprep.mubr.msk.f32.mxu0 %vm724_vm0, %v1331_v30 }
 0x4e6   : > { %4989 = vmatmul.mubr.msk.f32.vlgmr.msra.gmra.mrb[4].mxu0 %vm724_vm0, %v1332_v31 }
 0x5b9   : > { %v4990_v41 = vpop.f32.mrb[4].mxu0 }
 0x5ba   : > { %v1431_v42 = vsel %vm1429_vm2, 0.0, %v4990_v41  ;;  %v1409_v43 = vpop.f32.mrb[5].mxu0 }
 0x5bb   : > { %v1433_v44 = vadd.f32 %v1431_v42, %v5941_v7  ;;  %v1430_v45 = vsel %vm1428_vm3, 0.0, %v1409_v43 }
 0x5bc   : > { %v1432_v48 = vadd.f32 %v1430_v45, %v5937_v6 }
 0x5bd   : > { %v6069_v50 = vadd.f32 %v1435_v47, %v1433_v44 }
 0x5be   : > { %v6067_v49 = vadd.f32 %v1434_v46, %v1432_v48 }
 0x5c0   : > { %4999 = vmatprep.mubr.msk.f32.mxu1 %vm724_vm0, %v6067_v49 }
 0x5c1   : > { %5000 = vmatmul.mubr.msk.f32.vlgmr.msra.gmra.mrb[4].mxu1 %vm724_vm0, %v6069_v50 }
 0x694   : > { %v5001_v7 = vpop.f32.mrb[4].mxu1 }
 0x695   : > { %v1514_v51 = vpop.f32.mrb[5].mxu1 }
 0x696   : > { %5006 = vmatprep.mubr.msk.f32.mxu0 %vm814_vm1, %v1514_v51  ;;  %v6076_v52 = vpack.i.bf16 %v5001_v7, %v1514_v51 }
 0x698   : > { %5553 = vrot.lane.b32.xlu1 %v6076_v52, %s6701_s30 }
 0x70a   : > { %v5554_v6 = vpop.permute.xlu1 %5553 }
 0x70b   : > { %v5556_v53 = vunpack.i.h.bf16 %v5554_v6  ;;  %v5555_v54 = vunpack.i.l.bf16 %v5554_v6 }
 0x70d   : > { %v5289_v56 = vpack.c.bf16 %v5556_v53, %v5555_v54 }
 0x70f   : > { %5291 = vmatprep.subr.msk.bf16.mxu0 %vm6082_vm4, %v5289_v56 }
 0x710   : > { %5294 = vmatpush3.bf16.xpose.msk.msra.mxu0 %vm6082_vm4, %v5289_v56 }
 0x717   : > { %5007 = vmatmul.mubr.msk.f32.vlgmr.msra.gmra.mrb[6].mxu0 %vm814_vm1, %v5001_v7 }
 0x7ea   : > { %v5008_v62 = vpop.f32.mrb[6].mxu0 }
 0x7eb   : > { %v1617_v63 = vmul.f32 0.25, %v5008_v62  ;;  %v1607_v0 = vpop.f32.mrb[7].mxu0 }
 0x7ec   : > { %v1616_v1 = vmul.f32 0.25, %v1607_v0 }
 0x7ed   : > { %v1626_v2 = vsel %vm6100_vm6, -1e+09, %v1617_v63 }
 0x7ee   : > { %v1630_v3 = vsel %vm814_vm1, %v1626_v2, -inf  ;;  %v1625_v4 = vsel %vm6100_vm6, -1e+09, %v1616_v1 }
 0x7ef   : > { %1631 = vmax.xlane.f32.xlu1 %v1630_v3  ;;  %v1627_v40 = vsel %vm814_vm1, %v1625_v4, -inf }
 0x7f0   : > { %1628 = vmax.xlane.f32.xlu0 %v1627_v40 }
 0x800   : > { %5558 = vrot.lane.b32.xlu1 %v6076_v52, %s6702_s23 }
 0x804   : > { %1736 = vrot.lane.b32.xlu1 %v1514_v51, %s6675_s25 }
 0x808   : > { %1738 = vrot.lane.b32.xlu1 %v5001_v7, %s6675_s25 }
 0x87c   : > { %v1632_v5 = vpop.xlane.xlu1 %1631 }
 0x87d   : > { %v1634_v8 = vsub.f32 %v1626_v2, %v1632_v5  ;;  %v1629_v11 = vpop.xlane.xlu0 %1628 }
 0x87e   : > { %v1633_v15 = vsub.f32 %v1625_v4, %v1629_v11  ;;  %v1526_v11 = vld [vmem:[%s6654_s11 + $0x18] sm:$0xff] }
 0x87f   : > { %v1637_v16 = vmul.f32 1.442695, %v1634_v8  ;;  %v1525_v8 = vld [vmem:[%s6654_s11 + $0x10] sm:$0xff] }
 0x880   : > { %v1635_v17 = vmul.f32 1.442695, %v1633_v15  ;;  %v5559_v18 = vpop.permute.xlu1 %5558  ;;  %v5309_v15 = vpack.c.bf16 %v1526_v11, %v1525_v8  ;;  %v2233_v8 = vld [vmem:[%s6657_s14 + $0x18] sm:$0xff] }
 0x881   : > { %5636 = vpow2.f32 %v1637_v16  ;;  %v5561_v19 = vunpack.i.h.bf16 %v5559_v18  ;;  %v5560_v20 = vunpack.i.l.bf16 %v5559_v18  ;;  %v2237_v11 = vld [vmem:[%s6657_s14 + $0x38] sm:$0xff] }
 0x882   : > { %5638 = vpow2.f32 %v1635_v17 }
 0x883   : > { %v5295_v23 = vpack.c.bf16 %v5561_v19, %v5560_v20 }
 0x884   : > { %v1737_v42 = vpop.permute.xlu1 %1736 }
 0x885   : > { %5296 = vmatprep.subr.bf16.mxu1 %v5295_v23 }
 0x886   : > { %5298 = vmatpush3.bf16.msra.mxu1 %v5295_v23 }
 0x888   : > { %v1739_v43 = vpop.permute.xlu1 %1738 }
 0x88b   : > { %v5637_v24 = vpop.eup %5636 }
 0x88c   : > { %v1642_v25 = vsel %vm814_vm1, %v5637_v24, 0.0  ;;  %v5639_v26 = vpop.eup %5638 }
 0x88d   : > { %1643 = vadd.xlane.f32.xlu0 %v1642_v25  ;;  %v1639_v27 = vsel %vm814_vm1, %v5639_v26, 0.0  ;;  %v1524_v25 = vld [vmem:[%s6654_s11 + $0x8] sm:$0xff] }
 0x891   : > { %1640 = vadd.xlane.f32.xlu0 %v1639_v27 }
 0x8a7   : > { %5563 = vrot.lane.b32.xlu0 %v6076_v52, %s6677_s5 }
 0x91a   : > { %v1644_v29 = vpop.xlane.xlu0 %1643 }
 0x91b   : > { %5640 = vrcp.f32 %v1644_v29 }
 0x91e   : > { %v1641_v30 = vpop.xlane.xlu0 %1640 }
 0x91f   : > { %5642 = vrcp.f32 %v1641_v30  ;;  %v2104_v30 = vld [vmem:[%s6655_s12] sm:$0xff] }
 0x922   : > { %v5564_v31 = vpop.permute.xlu0 %5563 }
 0x923   : > { %v5566_v32 = vunpack.i.h.bf16 %v5564_v31  ;;  %v5565_v33 = vunpack.i.l.bf16 %v5564_v31  ;;  %v2105_v31 = vld [vmem:[%s6655_s12 + $0x8] sm:$0xff] }
 0x925   : > { %v5299_v34 = vpack.c.bf16 %v5566_v32, %v5565_v33  ;;  %v5641_v35 = vpop.eup %5640  ;;  %v5756_v32 = vmov 0.0|0.0   ;;  %v5318_v33 = vpack.c.bf16 %v2105_v31, %v2104_v30  ;;  %v2238_v30 = vld [vmem:[%s6657_s14 + $0x40] sm:$0xff]  ;;  %v2241_v31 = vld [vmem:[%s6657_s14 + $0x58] sm:$0xff] }
 0x926   : > { %v1648_v41 = vmul.f32 %v5641_v35, %v5637_v24  ;;  %v1523_v24 = vld [vmem:[%s6654_s11] sm:$0xff] }
 0x927   : > { %5301 = vmatprep.subr.msk.bf16.mxu1 %vm6082_vm4, %v5299_v34 }
 0x929   : > { %v5643_v36 = vpop.eup %5642 }
 0x92a   : > { %v1646_v37 = vmul.f32 %v5643_v36, %v5639_v26  ;;  %v5313_v26 = vpack.c.bf16 %v1524_v25, %v1523_v24  ;;  %v2239_v25 = vld [vmem:[%s6657_s14 + $0x48] sm:$0xff] }
 0x92c   : > { %5013 = vmatprep.mubr.msk.f32.mxu1 %vm814_vm1, %v1646_v37 }
 0x92d   : > { %5014 = vmatmul.mubr.msk.f32.vlgmr.msra.gmra.mrb[6].mxu1 %vm814_vm1, %v1648_v41 }
 0x92e   : > { %5304 = vmatpush3.bf16.xpose.msk.msra.mxu1 %vm6082_vm4, %v5299_v34  ;;  %5020 = vmatprep.mubr.msk.f32.mxu1 %vm814_vm1, %v1737_v42 }
 0x92f   : > { %5317 = vmatprep.subr.bf16.mxu1 %v5756_v32 }
 0x935   : > { %5021 = vmatmul.mubr.msk.f32.vlgmr.msra.gmra.mrb[8].mxu1 %vm814_vm1, %v1739_v43 }
 0x936   : > { %5048 = vmatprep.mubr.msk.f32.mxu1 %vm5757_vm7, %v5749_v12  ;;  %5319 = vmatpush3.bf16.msra.mxu1 %v5318_v33  ;;  %v5332_v33 = vpack.c.bf16 %v2241_v31, %v2238_v30  ;;  %v4675_v30 = vld [vmem:[%s6658_s15] ss:$0 sm:$0xff] }
 0xa00   : > { %v5015_v44 = vpop.f32.mrb[6].mxu1 }
 0xa01   : > { %v1727_v45 = vpop.f32.mrb[7].mxu1 }
 0xa08   : > { %v5022_v46 = vpop.f32.mrb[8].mxu1 }
 0xa09   : > { %v1828_v47 = vmul.f32 0.25, %v5022_v46  ;;  %v1818_v48 = vpop.f32.mrb[9].mxu1 }
 0xa0a   : > { %v1827_v7 = vmul.f32 0.25, %v1818_v48 }
 0xa0b   : > { %v1830_v51 = vsel %vm6100_vm6, -1e+09, %v1828_v47 }
 0xa0c   : > { %v1834_v6 = vsel %vm814_vm1, %v1830_v51, -inf  ;;  %v1829_v53 = vsel %vm6100_vm6, -1e+09, %v1827_v7 }
 0xa0d   : > { %1835 = vmax.xlane.f32.xlu1 %v1834_v6  ;;  %v1831_v54 = vsel %vm814_vm1, %v1829_v53, -inf }
 0xa0e   : > { %1832 = vmax.xlane.f32.xlu0 %v1831_v54 }
 0xa1e   : > { %5568 = vrot.lane.b32.xlu1 %v6076_v52, %s6674_s6  ;;  %s6713_s6 = sld [smem:[#allocation12_spill]] }
 0xa24   : > { %s6164_s25 = scalar_lea.vmem %s6713_s6, %s5929_s3  ;;  %s5689_s6 = sshll.u32 %s5759_s2, 4  ;;  %s5690_s6 = int_to_ptr.vmem [resolvable:$false] %s5689_s6 }
 0xa25   : > { %v6170_v34 = vld [vmem:[%s6164_s25] sm:$0x1]  ;;  %s5691_s7 = scalar_lea.vmem %s5690_s6, 512 }
 0xa26   : > { %5049 = vmatmul.mubr.msk.f32.vlgmr.msra.gmra.mrb[10].mxu1 %vm814_vm1, %v6170_v34 }
 0xa27   : > { %2317 = vmatprep.mubr.f32.mxu1 %v5749_v12 }
 0xa9a   : > { %v1836_v56 = vpop.xlane.xlu1 %1835 }
 0xa9b   : > { %v1838_v57 = vsub.f32 %v1830_v51, %v1836_v56  ;;  %v1833_v59 = vpop.xlane.xlu0 %1832 }
 0xa9c   : > { %v1837_v60 = vsub.f32 %v1829_v53, %v1833_v59 }
 0xa9d   : > { %v1841_v62 = vmul.f32 1.442695, %v1838_v57 }
 0xa9e   : > { %v1839_v63 = vmul.f32 1.442695, %v1837_v60  ;;  %v5569_v0 = vpop.permute.xlu1 %5568 }
 0xa9f   : > { %v5571_v1 = vunpack.i.h.bf16 %v5569_v0  ;;  %v5570_v2 = vunpack.i.l.bf16 %v5569_v0 }
 0xaa0   : > { %5644 = vpow2.f32 %v1839_v63 }
 0xaa1   : > { %v5305_v3 = vpack.c.bf16 %v5571_v1, %v5570_v2  ;;  %5646 = vpow2.f32 %v1841_v62 }
 0xaa3   : > { %5306 = vmatprep.subr.bf16.mxu0 %v5305_v3 }
 0xaa4   : > { %5308 = vmatpush3.bf16.msra.mxu0 %v5305_v3  ;;  %v2231_v3 = vld [vmem:[%s6657_s14 + $0x8] sm:$0xff] }
 0xaa5   : > { %5310 = vmatprep.subr.bf16.mxu0 %v5309_v15 }
 0xaaa   : > { %v5645_v4 = vpop.eup %5644 }
 0xaab   : > { %v1843_v40 = vsel %vm814_vm1, %v5645_v4, 0.0  ;;  %v5647_v5 = vpop.eup %5646 }
 0xaac   : > { %1844 = vadd.xlane.f32.xlu0 %v1843_v40  ;;  %v1846_v52 = vsel %vm814_vm1, %v5647_v5, 0.0  ;;  %v2230_v40 = vld [vmem:[%s6657_s14] sm:$0xff] }
 0xab0   : > { %1847 = vadd.xlane.f32.xlu0 %v1846_v52 }
 0xaf9   : > { %v2176_v54 = vpop.f32.mrb[10].mxu1 }
 0xafa   : > { %v5050_v57 = vpop.f32.mrb[11].mxu1 }
 0xb39   : > { %v1845_v16 = vpop.xlane.xlu0 %1844 }
 0xb3a   : > { %5648 = vrcp.f32 %v1845_v16 }
 0xb3d   : > { %v1848_v17 = vpop.xlane.xlu0 %1847 }
 0xb3e   : > { %5650 = vrcp.f32 %v1848_v17  ;;  %v5322_v17 = vpack.c.bf16 %v2233_v8, %v2230_v40 }
 0xb44   : > { %v5649_v18 = vpop.eup %5648 }
 0xb45   : > { %v1850_v19 = vmul.f32 %v5649_v18, %v5645_v4  ;;  %v2234_v4 = vld [vmem:[%s6657_s14 + $0x20] sm:$0xff] }
 0xb46   : > { %v5320_v52 = vpack.c.bf16 %v2234_v4, %v2231_v3  ;;  %v687_v4 = vadd.s32 4294967294, %v5945_v9 }
 0xb47   : > { %5027 = vmatprep.mubr.msk.f32.mxu0 %vm814_vm1, %v1850_v19  ;;  %v2232_v19 = vld [vmem:[%s6657_s14 + $0x10] sm:$0xff] }
 0xb48   : > { %v5651_v20 = vpop.eup %5650  ;;  %5321 = vmatprep.subr.bf16.mxu1 %v5320_v52  ;;  %vm689_vm8 = vcmp.eq.s32.totalorder %v5947_v10, %v687_v4 }
 0xb49   : > { %v1852_v23 = vmul.f32 %v5651_v20, %v5647_v5  ;;  %v2235_v20 = vld [vmem:[%s6657_s14 + $0x28] sm:$0xff]  ;;  %5323 = vmatpush1.bf16.msra.mxu1 %v5322_v17  ;;  %v688_v17 = vadd.s32 4294967294, %v5957_v14 }
 0xb4a   : > { %v5328_v24 = vpack.c.bf16 %v2235_v20, %v2232_v19  ;;  %v711_v20 = vadd.s32 2, %v5945_v9 }
 0xb4b   : > { %5028 = vmatmul.mubr.msk.f32.vlgmr.msra.gmra.mrb[8].mxu0 %vm814_vm1, %v1852_v23  ;;  %v2236_v23 = vld [vmem:[%s6657_s14 + $0x30] sm:$0xff]  ;;  %vm690_vm9 = vcmp.eq.s32.totalorder %v5947_v10, %v688_v17 }
 0xb4c   : > { %5312 = vmatpush3.bf16.msra.mxu0 %v5309_v15  ;;  %v2240_v15 = vld [vmem:[%s6657_s14 + $0x50] sm:$0xff]  ;;  %v6277_v19 = vsel %vm690_vm9, 1.0, %v5749_v12  ;;  %vm713_vm10 = vcmp.eq.s32.totalorder %v5947_v10, %v711_v20 }
 0xb4d   : > { %5314 = vmatprep.subr.bf16.mxu0 %v5313_v26  ;;  %v5324_v18 = vpack.c.bf16 %v2240_v15, %v2237_v11 }
 0xb4f   : > { %5325 = vmatprep.subr.bf16.mxu1 %v5324_v18 }
 0xc1e   : > { %v5029_v27 = vpop.f32.mrb[8].mxu0 }
 0xc1f   : > { %v1931_v29 = vpop.f32.mrb[9].mxu0 }
 0xc20   : > { %5034 = vmatprep.mubr.msk.f32.mxu0 %vm814_vm1, %v1931_v29 }
 0xc21   : > { %5035 = vmatmul.mubr.msk.f32.vlgmr.msra.gmra.mrb[10].mxu0 %vm814_vm1, %v5029_v27 }
 0xc22   : > { %5041 = vmatprep.mubr.msk.f32.mxu0 %vm814_vm1, %v1727_v45  ;;  %5316 = vmatpush3.bf16.msra.mxu0 %v5313_v26  ;;  %v5326_v26 = vpack.c.bf16 %v2239_v25, %v2236_v23  ;;  %v6286_v23 = vsel %vm713_vm10, 1.0, %v5749_v12  ;;  %v2753_v25 = vld [vmem:[%s6659_s16 + $0x20] sm:$0xff] }
 0xc23   : > { %5329 = vmatprep.subr.bf16.mxu0 %v5328_v24 }
 0xc24   : > { %5327 = vmatpush1.bf16.msra.mxu1 %v5326_v26 }
 0xc29   : > { %5042 = vmatmul.mubr.msk.f32.vlgmr.msra.gmra.mrb[10].mxu0 %vm814_vm1, %v5015_v44 }
 0xc2a   : > { %5331 = vmatpush3.bf16.msra.mxu0 %v5328_v24  ;;  %v712_v24 = vadd.s32 2, %v5957_v14  ;;  %v2754_v14 = vld [vmem:[%s6659_s16 + $0x28] sm:$0xff] }
 0xc2b   : > { %5333 = vmatprep.subr.bf16.mxu0 %v5332_v33  ;;  %v5360_v26 = vpack.c.bf16 %v2754_v14, %v2753_v25  ;;  %v4681_v25 = vld [vmem:[%s6653_s10 + $0x28] sm:$0xff]  ;;  %v4682_v14 = vld [vmem:[%s6653_s10 + $0x30] sm:$0xff] }
 0xc2c   : > { %vm714_vm11 = vcmp.eq.s32.totalorder %v5947_v10, %v712_v24  ;;  %v2755_v10 = vld [vmem:[%s6659_s16 + $0x30] sm:$0xff]  ;;  %v4680_v24 = vld [vmem:[%s6653_s10 + $0x20] sm:$0xff] }
 0xc2d   : > { %v6295_v9 = vsel %vm714_vm11, 1.0, %v5749_v12 }
 0xc2e   : > { %5335 = vmatpush3.bf16.msra.mxu0 %v5332_v33 }
 0xcfc   : > { %v5043_v35 = vpop.f32.mrb[10].mxu0 }
 0xcfd   : > { %v2093_v36 = vpop.f32.mrb[11].mxu0  ;;  %v2103_v41 = vadd.f32 %v5043_v35, %v6069_v50  ;;  %v2106_v50 = vld [vmem:[%s6656_s13] sm:$0x1] }
 0xcfe   : > { %v2102_v37 = vadd.f32 %v2093_v36, %v6067_v49  ;;  %v2177_v56 = vadd.f32 %v2176_v54, %v2106_v50 }
 0xcff   : > { %v2183_v43 = vsel %vm724_vm0, %v2103_v41, 0.0 }
 0xd00   : > { %v2180_v42 = vsel %vm724_vm0, %v2102_v37, 0.0  ;;  %v2211_v59 = vrot.slane %v2177_v56, %v6096_v58 }
 0xd01   : > { %2181 = vadd.xlane.f32.xlu0 %v2180_v42 }
 0xd05   : > { %2184 = vadd.xlane.f32.xlu0 %v2183_v43 }
 0xd8e   : > { %v2182_v44 = vpop.xlane.xlu0 %2181 }
 0xd8f   : > { %v2187_v45 = vmul.f32 0.03125, %v2182_v44 }
 0xd91   : > { %v2189_v46 = vsub.f32 %v2102_v37, %v2187_v45 }
 0xd92   : > { %v2185_v47 = vpop.xlane.xlu0 %2184 }
 0xd93   : > { %v2188_v48 = vmul.f32 0.03125, %v2185_v47  ;;  %v2191_v7 = vmul.f32 %v2189_v46, %v2189_v46 }
 0xd95   : > { %v2190_v51 = vsub.f32 %v2103_v41, %v2188_v48  ;;  %v2193_v6 = vsel %vm724_vm0, %v2191_v7, 0.0 }
 0xd96   : > { %2194 = vadd.xlane.f32.xlu0 %v2193_v6 }
 0xd97   : > { %v2192_v53 = vmul.f32 %v2190_v51, %v2190_v51 }
 0xd99   : > { %v2196_v49 = vsel %vm724_vm0, %v2192_v53, 0.0 }
 0xd9a   : > { %2197 = vadd.xlane.f32.xlu0 %v2196_v49 }
 0xdb0   : > { %2223 = vrot.lane.b32.xlu0 %v2211_v59, %s6678_s27 }
 0xe23   : > { %v2195_v60 = vpop.xlane.xlu0 %2194 }
 0xe24   : > { %v2200_v62 = vmul.f32 0.032258064, %v2195_v60  ;;  %v2749_v60 = vld [vmem:[%s6659_s16] sm:$0xff] }
 0xe26   : > { %v2202_v63 = vadd.f32 1e-06, %v2200_v62  ;;  %v2750_v62 = vld [vmem:[%s6659_s16 + $0x8] sm:$0xff] }
 0xe27   : > { %v2198_v0 = vpop.xlane.xlu0 %2197 }
 0xe28   : > { %5652 = vrsqrt.f32 %v2202_v63  ;;  %v2201_v1 = vmul.f32 0.032258064, %v2198_v0  ;;  %v2751_v63 = vld [vmem:[%s6659_s16 + $0x10] sm:$0xff]  ;;  %v5352_v0 = vpack.c.bf16 %v2750_v62, %v2749_v60 }
 0xe2a   : > { %v2203_v2 = vadd.f32 1e-06, %v2201_v1  ;;  %v2752_v1 = vld [vmem:[%s6659_s16 + $0x18] sm:$0xff]  ;;  %5353 = vmatprep.subr.bf16.mxu1 %v5352_v0 }
 0xe2b   : > { %v2224_v36 = vpop.permute.xlu0 %2223 }
 0xe2c   : > { %5654 = vrsqrt.f32 %v2203_v2  ;;  %v5356_v2 = vpack.c.bf16 %v2752_v1, %v2751_v63 }
 0xe32   : > { %v5653_v5 = vpop.eup %5652 }
 0xe33   : > { %v2206_v16 = vmul.f32 %v5653_v5, %v2189_v46 }
 0xe35   : > { %2214 = vrot.lane.b32.xlu1 %v2206_v16, %s6714_s0  ;;  %v6268_v16 = vsel %vm689_vm8, 1.0, %v5749_v12 }
 0xe36   : > { %v5655_v27 = vpop.eup %5654 }
 0xe37   : > { %v2207_v29 = vmul.f32 %v5655_v27, %v2190_v51  ;;  %v2756_v27 = vld [vmem:[%s6659_s16 + $0x38] sm:$0xff] }
 0xe39   : > { %2216 = vrot.lane.b32.xlu1 %v2207_v29, %s6714_s0  ;;  %v5364_v29 = vpack.c.bf16 %v2756_v27, %v2755_v10  ;;  %v5371_v10 = vpack.c.bf16 %v4681_v25, %v4680_v24  ;;  %v4683_v27 = vld [vmem:[%s6653_s10 + $0x38] sm:$0xff] }
 0xea7   : > { %v2215_v35 = vpop.permute.xlu1 %2214 }
 0xea8   : > { %v2220_v37 = vmul.f32 %v2215_v35, %v2211_v59 }
 0xeaa   : > { %v2226_v41 = vadd.f32 %v2224_v36, %v2220_v37 }
 0xeab   : > { %v2217_v42 = vpop.permute.xlu1 %2216 }
 0xeac   : > { %v2221_v43 = vmul.f32 %v2217_v42, %v2211_v59  ;;  %v2228_v44 = vsel %vm1428_vm3, 0.0, %v2226_v41 }
 0xead   : > { %2245 = vrot.lane.b32.xlu1 %v2228_v44, %s6701_s30  ;;  %v2850_v44 = vld [vmem:[%s6661_s18] sm:$0xff] }
 0xeae   : > { %v2227_v45 = vadd.f32 %v2224_v36, %v2221_v43 }
 0xeb0   : > { %v2229_v46 = vsel %vm1429_vm2, 0.0, %v2227_v45  ;;  %v2851_v45 = vld [vmem:[%s6661_s18 + $0x8] sm:$0xff] }
 0xeb1   : > { %2247 = vrot.lane.b32.xlu1 %v2229_v46, %s6701_s30  ;;  %v5369_v46 = vpack.c.bf16 %v2851_v45, %v2850_v44 }
 0xf1f   : > { %v6230_v47 = vpop.permute.xlu1 %2245 }
 0xf20   : > { %4663 = vmatmul.mubr.msk.f32.vlgmr.msra.gmra.mrb[12].mxu1 %vm724_vm0, %v6230_v47  ;;  %5059 = vmatprep.mubr.msk.f32.mxu0 %vm724_vm0, %v6230_v47 }
 0xf21   : > { %2323 = vmatprep.mubr.f32.mxu1 %v5749_v12  ;;  %5355 = vmatpush3.bf16.msra.mxu1 %v5352_v0 }
 0xf22   : > { %5357 = vmatprep.subr.bf16.mxu1 %v5356_v2 }
 0xf23   : > { %v6237_v48 = vpop.permute.xlu1 %2247 }
 0xf24   : > { %4664 = vmatmul.mubr.msk.f32.gmra.mrb[14].mxu1 %vm724_vm0, %v6237_v48  ;;  %5060 = vmatmul.mubr.msk.f32.vlgmr.msra.gmra.mrb[12].mxu0 %vm724_vm0, %v6237_v48 }
 0xf25   : > { %5066 = vmatprep.mubr.msk.f32.mxu0 %vm814_vm1, %v5952_v13  ;;  %5359 = vmatpush3.bf16.msra.mxu1 %v5356_v2 }
 0xf26   : > { %5361 = vmatprep.subr.bf16.mxu1 %v5360_v26 }
 0xf29   : > { %5363 = vmatpush3.bf16.msra.mxu1 %v5360_v26 }
 0xf2a   : > { %5365 = vmatprep.subr.bf16.mxu1 %v5364_v29 }
 0xf2d   : > { %5367 = vmatpush3.bf16.msra.mxu1 %v5364_v29 }
 0xf2e   : > { %5368 = vmatprep.subr.bf16.mxu1 %v5756_v32 }
 0xff3   : > { %v2319_v7 = vpop.f32.mrb[12].mxu1 }
 0xff4   : > { %v6245_v51 = vpop.f32.mrb[13].mxu1 }
 0xff7   : > { %v2325_v6 = vpop.f32.mrb[14].mxu1  ;;  %v5061_v53 = vpop.f32.mrb[12].mxu0 }
 0xff8   : > { %v5572_v49 = vpack.i.bf16 %v2325_v6, %v2319_v7  ;;  %v5340_v50 = vpack.c.bf16 %v2325_v6, %v2319_v7  ;;  %v6247_v54 = vpop.f32.mrb[15].mxu1  ;;  %v2396_v56 = vpop.f32.mrb[13].mxu0  ;;  %v4676_v7 = vld [vmem:[%s6660_s17] ss:$0 sm:$0xff] }
 0xff9   : > { %v5577_v57 = vpack.i.bf16 %v6247_v54, %v6245_v51  ;;  %v5348_v59 = vpack.c.bf16 %v5061_v53, %v2396_v56 }
 0xffa   : > { %5573 = vrot.lane.b32.xlu1 %v5572_v49, %s6702_s23 }
 0xffe   : > { %5578 = vrot.lane.b32.xlu1 %v5577_v57, %s6702_s23 }
0x106c   : > { %v5574_v3 = vpop.permute.xlu1 %5573 }
0x106d   : > { %v5576_v40 = vunpack.i.h.bf16 %v5574_v3  ;;  %v5575_v5 = vunpack.i.l.bf16 %v5574_v3 }
0x106f   : > { %v5336_v52 = vpack.c.bf16 %v5576_v40, %v5575_v5 }
0x1070   : > { %v5579_v8 = vpop.permute.xlu1 %5578 }
0x1071   : > { %v5581_v11 = vunpack.i.h.bf16 %v5579_v8  ;;  %v5580_v15 = vunpack.i.l.bf16 %v5579_v8  ;;  %5337 = vmatprep.subr.bf16.mxu0 %v5336_v52 }
0x1072   : > { %5339 = vmatpush3.bf16.msra.mxu0 %v5336_v52 }
0x1073   : > { %5341 = vmatprep.subr.bf16.mxu0 %v5340_v50  ;;  %v5344_v18 = vpack.c.bf16 %v5581_v11, %v5580_v15 }
0x1075   : > { %5067 = vmatmul.mubr.msk.f32.vlgmr.msra.gmra.mrb[14].mxu0 %vm814_vm1, %v5966_v21 }
0x1076   : > { %5343 = vmatpush3.bf16.msra.mxu0 %v5340_v50  ;;  %5073 = vmatprep.mubr.msk.f32.mxu0 %vm814_vm1, %v6268_v16 }
0x1077   : > { %5345 = vmatprep.subr.bf16.mxu0 %v5344_v18 }
0x107d   : > { %5074 = vmatmul.mubr.msk.f32.vlgmr.msra.gmra.mrb[14].mxu0 %vm814_vm1, %v6277_v19 }
0x107e   : > { %5347 = vmatpush3.bf16.msra.mxu0 %v5344_v18  ;;  %5080 = vmatprep.mubr.msk.f32.mxu0 %vm814_vm1, %v5969_v22  ;;  %v2852_v18 = vld [vmem:[%s6662_s19] sm:$0x1] }
0x107f   : > { %5349 = vmatprep.subr.bf16.mxu0 %v5348_v59 }
0x1085   : > { %5081 = vmatmul.mubr.msk.f32.vlgmr.msra.gmra.mrb[14].mxu0 %vm814_vm1, %v5979_v28 }
0x1086   : > { %5351 = vmatpush3.bf16.msra.mxu0 %v5348_v59  ;;  %5087 = vmatprep.mubr.msk.f32.mxu0 %vm814_vm1, %v6286_v23 }
0x1087   : > { %5372 = vmatprep.subr.bf16.mxu0 %v5371_v10 }
0x108d   : > { %5088 = vmatmul.mubr.msk.f32.vlgmr.msra.gmra.mrb[14].mxu0 %vm814_vm1, %v6295_v9 }
0x108e   : > { %5374 = vmatpush3.bf16.msra.mxu0 %v5371_v10 }
0x1160   : > { %v5089_v31 = vpop.f32.mrb[14].mxu0 }
0x1161   : > { %v5465_v33 = vadd.f32 %v5089_v31, %v6247_v54  ;;  %v2728_v35 = vpop.f32.mrb[15].mxu0 }
0x1162   : > { %v5466_v36 = vadd.f32 %v2728_v35, %v6245_v51 }
0x1163   : > { %v2746_v37 = vadd.f32 %v5465_v33, %v4675_v30 }
0x1164   : > { %v2745_v41 = vadd.f32 %v5466_v36, %v4675_v30  ;;  %v5375_v30 = vpack.c.bf16 %v4683_v27, %v4682_v14 }
0x1165   : > { %v2748_v43 = vmax.f32 %v2746_v37, 0.0 }
0x1166   : > { %v2747_v42 = vmax.f32 %v2745_v41, 0.0  ;;  %5376 = vmatprep.subr.bf16.mxu0 %v5375_v30 }
0x1167   : > { %5378 = vmatpush3.bf16.msra.mxu0 %v5375_v30 }
0x1168   : > { %5106 = vmatprep.mubr.msk.f32.mxu1 %vm2764_vm12, %v2747_v42 }
0x1169   : > { %5107 = vmatmul.mubr.msk.f32.vlgmr.msra.gmra.mrb[16].mxu1 %vm2764_vm12, %v2748_v43 }
0x116a   : > { %5113 = vmatprep.mubr.msk.f32.mxu1 %vm5757_vm7, %v5749_v12  ;;  %5370 = vmatpush3.bf16.msra.mxu1 %v5369_v46 }
0x116d   : > { %5114 = vmatmul.mubr.msk.f32.vlgmr.msra.gmra.mrb[18].mxu1 %vm814_vm1, %v6170_v34 }
0x123c   : > { %v5108_v51 = vpop.f32.mrb[16].mxu1 }
0x123d   : > { %v2843_v6 = vadd.f32 %v5108_v51, %v4676_v7  ;;  %v2837_v53 = vpop.f32.mrb[17].mxu1 }
0x123e   : > { %v2838_v49 = vadd.f32 %v4676_v7, %v2837_v53 }
0x123f   : > { %v2849_v50 = vadd.f32 %v2843_v6, %v6237_v48 }
0x1240   : > { %v2848_v54 = vadd.f32 %v2838_v49, %v6230_v47  ;;  %v2919_v47 = vpop.f32.mrb[18].mxu1 }
0x1241   : > { %v2926_v56 = vsel %vm724_vm0, %v2849_v50, 0.0  ;;  %v5115_v40 = vpop.f32.mrb[19].mxu1  ;;  %v2920_v20 = vadd.f32 %v2919_v47, %v2852_v18 }
0x1242   : > { %2927 = vadd.xlane.f32.xlu1 %v2926_v56  ;;  %v2923_v57 = vsel %vm724_vm0, %v2848_v54, 0.0 }
0x1243   : > { %2924 = vadd.xlane.f32.xlu0 %v2923_v57  ;;  %v2952_v31 = vrot.slane %v2920_v20, %v6096_v58 }
0x12cf   : > { %v2928_v59 = vpop.xlane.xlu1 %2927 }
0x12d0   : > { %v2930_v60 = vmul.f32 0.03125, %v2928_v59  ;;  %v2925_v62 = vpop.xlane.xlu0 %2924 }
0x12d1   : > { %v2929_v63 = vmul.f32 0.03125, %v2925_v62 }
0x12d2   : > { %v2932_v0 = vsub.f32 %v2849_v50, %v2930_v60 }
0x12d3   : > { %v2931_v1 = vsub.f32 %v2848_v54, %v2929_v63 }
0x12d4   : > { %v2934_v4 = vmul.f32 %v2932_v0, %v2932_v0 }
0x12d5   : > { %v2933_v2 = vmul.f32 %v2931_v1, %v2931_v1 }
0x12d6   : > { %v2938_v48 = vsel %vm724_vm0, %v2934_v4, 0.0 }
0x12d7   : > { %v2935_v3 = vsel %vm724_vm0, %v2933_v2, 0.0 }
0x12d8   : > { %2936 = vadd.xlane.f32.xlu0 %v2935_v3 }
0x12dc   : > { %2939 = vadd.xlane.f32.xlu0 %v2938_v48 }
0x1365   : > { %v2937_v5 = vpop.xlane.xlu0 %2936 }
0x1366   : > { %v2941_v52 = vmul.f32 0.032258064, %v2937_v5 }
0x1368   : > { %v2943_v8 = vadd.f32 1e-06, %v2941_v52 }
0x1369   : > { %v2940_v11 = vpop.xlane.xlu0 %2939 }
0x136a   : > { %5656 = vrsqrt.f32 %v2943_v8  ;;  %v2942_v15 = vmul.f32 0.032258064, %v2940_v11 }
0x136c   : > { %v2944_v17 = vadd.f32 1e-06, %v2942_v15 }
0x136e   : > { %5658 = vrsqrt.f32 %v2944_v17 }
0x1374   : > { %v5657_v26 = vpop.eup %5656 }
0x1375   : > { %v2947_v29 = vmul.f32 %v5657_v26, %v2931_v1 }
0x1377   : > { %2955 = vrot.lane.b32.xlu1 %v2947_v29, %s6714_s0 }
0x1378   : > { %v5659_v33 = vpop.eup %5658 }
0x1379   : > { %v2948_v35 = vmul.f32 %v5659_v33, %v2932_v0 }
0x137b   : > { %2964 = vrot.lane.b32.xlu1 %v2952_v31, %s6714_s0  ;;  %2957 = vrot.lane.b32.xlu0 %v2948_v35, %s6714_s0 }
0x13e9   : > { %v2956_v36 = vpop.permute.xlu1 %2955 }
0x13ea   : > { %v2961_v37 = vmul.f32 %v2956_v36, %v2952_v31 }
0x13ed   : > { %v2965_v41 = vpop.permute.xlu1 %2964  ;;  %v2958_v42 = vpop.permute.xlu0 %2957 }
0x13ee   : > { %v2967_v43 = vadd.f32 %v2965_v41, %v2961_v37  ;;  %v2962_v44 = vmul.f32 %v2958_v42, %v2952_v31 }
0x13f0   : > { %v2968_v45 = vadd.f32 %v2965_v41, %v2962_v44  ;;  %v2969_v46 = vsel %vm1428_vm3, 0.0, %v2967_v43 }
0x13f1   : > { %2978 = vrot.lane.b32.xlu1 %v2969_v46, %s6701_s30 }
0x13f2   : > { %v2970_v7 = vsel %vm1429_vm2, 0.0, %v2968_v45 }
0x13f3   : > { %2980 = vrot.lane.b32.xlu0 %v2970_v7, %s6701_s30 }
0x1463   : > { %v6363_v51 = vpop.permute.xlu1 %2978 }
0x1464   : > { %5124 = vmatprep.mubr.msk.f32.mxu0 %vm724_vm0, %v6363_v51 }
0x1465   : > { %v6367_v6 = vpop.permute.xlu0 %2980 }
0x1466   : > { %5125 = vmatmul.mubr.msk.f32.vlgmr.msra.gmra.mrb[16].mxu0 %vm724_vm0, %v6367_v6 }
0x1539   : > { %v5126_v53 = vpop.f32.mrb[16].mxu0 }
0x153a   : > { %v3052_v49 = vpop.f32.mrb[17].mxu0 }
0x153b   : > { %5131 = vmatprep.mubr.msk.f32.mxu1 %vm814_vm1, %v3052_v49  ;;  %v6372_v50 = vpack.i.bf16 %v5126_v53, %v3052_v49 }
0x153d   : > { %5588 = vrot.lane.b32.xlu0 %v6372_v50, %s6715_s8  ;;  %5583 = vrot.lane.b32.xlu1 %v6372_v50, %s6701_s30 }
0x1541   : > { %3270 = vrot.lane.b32.xlu0 %v5126_v53, %s6716_s21  ;;  %3268 = vrot.lane.b32.xlu1 %v3052_v49, %s6716_s21 }
0x15af   : > { %v5589_v54 = vpop.permute.xlu0 %5588  ;;  %v5584_v56 = vpop.permute.xlu1 %5583 }
0x15b0   : > { %v5591_v57 = vunpack.i.h.bf16 %v5589_v54  ;;  %v5590_v59 = vunpack.i.l.bf16 %v5589_v54  ;;  %v5586_v60 = vunpack.i.h.bf16 %v5584_v56  ;;  %v5585_v62 = vunpack.i.l.bf16 %v5584_v56 }
0x15b2   : > { %v5379_v63 = vpack.c.bf16 %v5586_v60, %v5585_v62  ;;  %v5389_v0 = vpack.c.bf16 %v5591_v57, %v5590_v59 }
0x15b3   : > { %v3269_v1 = vpop.permute.xlu1 %3268  ;;  %v3271_v2 = vpop.permute.xlu0 %3270 }
0x15b4   : > { %5381 = vmatprep.subr.msk.bf16.mxu1 %vm6082_vm4, %v5379_v63 }
0x15b5   : > { %5384 = vmatpush3.bf16.xpose.msk.msra.mxu1 %vm6082_vm4, %v5379_v63 }
0x15b6   : > { %5391 = vmatprep.subr.msk.bf16.mxu1 %vm6082_vm4, %v5389_v0 }
0x15bc   : > { %5132 = vmatmul.mubr.msk.f32.vlgmr.msra.gmra.mrb[20].mxu1 %vm814_vm1, %v5126_v53 }
0x15bd   : > { %5394 = vmatpush3.bf16.xpose.msk.msra.mxu1 %vm6082_vm4, %v5389_v0  ;;  %5145 = vmatprep.mubr.msk.f32.mxu1 %vm814_vm1, %v3269_v1 }
0x15be   : > { %5407 = vmatprep.subr.bf16.mxu1 %v5756_v32 }
0x15c4   : > { %5146 = vmatmul.mubr.msk.f32.vlgmr.msra.gmra.mrb[22].mxu1 %vm814_vm1, %v3271_v2 }
0x15c5   : > { %5173 = vmatprep.mubr.msk.f32.mxu1 %vm5757_vm7, %v5749_v12 }
0x168f   : > { %v5133_v3 = vpop.f32.mrb[20].mxu1 }
0x1690   : > { %v3156_v4 = vmul.f32 0.25, %v5133_v3  ;;  %v3146_v48 = vpop.f32.mrb[21].mxu1 }
0x1691   : > { %v3155_v47 = vmul.f32 0.25, %v3146_v48 }
0x1692   : > { %v3158_v40 = vsel %vm6100_vm6, -1e+09, %v3156_v4 }
0x1693   : > { %v3162_v55 = vsel %vm814_vm1, %v3158_v40, -inf  ;;  %v3157_v5 = vsel %vm6100_vm6, -1e+09, %v3155_v47 }
0x1694   : > { %3163 = vmax.xlane.f32.xlu0 %v3162_v55  ;;  %v3159_v52 = vsel %vm814_vm1, %v3157_v5, -inf }
0x1695   : > { %3160 = vmax.xlane.f32.xlu1 %v3159_v52 }
0x1697   : > { %v5147_v8 = vpop.f32.mrb[22].mxu1 }
0x1698   : > { %v3360_v11 = vmul.f32 0.25, %v5147_v8  ;;  %v3350_v15 = vpop.f32.mrb[23].mxu1  ;;  %v4688_v8 = vld [vmem:[%s6654_s11 + $0x30] sm:$0xff] }
0x1699   : > { %v3359_v17 = vmul.f32 0.25, %v3350_v15 }
0x169a   : > { %v3362_v18 = vsel %vm6100_vm6, -1e+09, %v3360_v11  ;;  %v4689_v11 = vld [vmem:[%s6654_s11 + $0x38] sm:$0xff] }
0x169b   : > { %v3366_v20 = vsel %vm814_vm1, %v3362_v18, -inf  ;;  %v3361_v24 = vsel %vm6100_vm6, -1e+09, %v3359_v17  ;;  %v5399_v15 = vpack.c.bf16 %v4689_v11, %v4688_v8  ;;  %v4686_v17 = vld [vmem:[%s6654_s11 + $0x20] sm:$0xff]  ;;  %v4716_v8 = vld [vmem:[%s6657_s14 + $0x90] sm:$0xff] }
0x169c   : > { %3367 = vmax.xlane.f32.xlu1 %v3366_v20  ;;  %v3363_v25 = vsel %vm814_vm1, %v3361_v24, -inf }
0x169d   : > { %3364 = vmax.xlane.f32.xlu0 %v3363_v25 }
0x1721   : > { %v3164_v14 = vpop.xlane.xlu0 %3163 }
0x1722   : > { %v3166_v26 = vsub.f32 %v3158_v40, %v3164_v14  ;;  %v3161_v10 = vpop.xlane.xlu1 %3160 }
0x1723   : > { %v3165_v27 = vsub.f32 %v3157_v5, %v3161_v10  ;;  %v4706_v10 = vld [vmem:[%s6655_s12 + $0x10] sm:$0xff] }
0x1724   : > { %v3169_v29 = vmul.f32 1.442695, %v3166_v26 }
0x1725   : > { %v3167_v30 = vmul.f32 1.442695, %v3165_v27  ;;  %v4707_v27 = vld [vmem:[%s6655_s12 + $0x18] sm:$0xff] }
0x1726   : > { %5660 = vpow2.f32 %v3169_v29  ;;  %v5408_v29 = vpack.c.bf16 %v4707_v27, %v4706_v10 }
0x1727   : > { %5662 = vpow2.f32 %v3167_v30 }
0x1728   : > { %5409 = vmatpush3.bf16.msra.mxu1 %v5408_v29 }
0x1729   : > { %v3368_v31 = vpop.xlane.xlu1 %3367 }
0x172a   : > { %v3370_v33 = vsub.f32 %v3362_v18, %v3368_v31  ;;  %v3365_v35 = vpop.xlane.xlu0 %3364  ;;  %v4687_v18 = vld [vmem:[%s6654_s11 + $0x28] sm:$0xff] }
0x172b   : > { %v3369_v36 = vsub.f32 %v3361_v24, %v3365_v35  ;;  %v5403_v20 = vpack.c.bf16 %v4687_v18, %v4686_v17  ;;  %5174 = vmatmul.mubr.msk.f32.vlgmr.msra.gmra.mrb[24].mxu1 %vm814_vm1, %v6170_v34  ;;  %v4718_v17 = vld [vmem:[%s6657_s14 + $0xa0] sm:$0xff]  ;;  %v4721_v18 = vld [vmem:[%s6657_s14 + $0xb8] sm:$0xff] }
0x172c   : > { %v3373_v37 = vmul.f32 1.442695, %v3370_v33  ;;  %3850 = vmatprep.mubr.f32.mxu1 %v5749_v12 }
0x172d   : > { %v3371_v41 = vmul.f32 1.442695, %v3369_v36 }
0x172e   : > { %5664 = vpow2.f32 %v3373_v37 }
0x172f   : > { %5666 = vpow2.f32 %v3371_v41 }
0x1730   : > { %v5661_v61 = vpop.eup %5660 }
0x1731   : > { %v5663_v42 = vpop.eup %5662  ;;  %v3174_v43 = vsel %vm814_vm1, %v5661_v61, 0.0 }
0x1732   : > { %3175 = vadd.xlane.f32.xlu1 %v3174_v43  ;;  %v3171_v44 = vsel %vm814_vm1, %v5663_v42, 0.0 }
0x1733   : > { %3172 = vadd.xlane.f32.xlu0 %v3171_v44 }
0x1738   : > { %v5665_v45 = vpop.eup %5664 }
0x1739   : > { %v5667_v46 = vpop.eup %5666  ;;  %v3378_v7 = vsel %vm814_vm1, %v5665_v45, 0.0 }
0x173a   : > { %3379 = vadd.xlane.f32.xlu1 %v3378_v7  ;;  %v3375_v53 = vsel %vm814_vm1, %v5667_v46, 0.0 }
0x173b   : > { %3376 = vadd.xlane.f32.xlu0 %v3375_v53 }
0x174b   : > { %5598 = vrot.lane.b32.xlu1 %v6372_v50, %s6717_s29 }
0x1751   : > { %5593 = vrot.lane.b32.xlu0 %v6372_v50, %s6702_s23 }
0x17bf   : > { %v3176_v54 = vpop.xlane.xlu1 %3175 }
0x17c0   : > { %v3173_v49 = vpop.xlane.xlu0 %3172 }
0x17c1   : > { %5668 = vrcp.f32 %v3173_v49 }
0x17c2   : > { %5670 = vrcp.f32 %v3176_v54 }
0x17c7   : > { %v3380_v56 = vpop.xlane.xlu1 %3379 }
0x17c8   : > { %v3377_v57 = vpop.xlane.xlu0 %3376 }
0x17c9   : > { %5672 = vrcp.f32 %v3377_v57 }
0x17ca   : > { %5674 = vrcp.f32 %v3380_v56 }
0x17cb   : > { %v5669_v59 = vpop.eup %5668  ;;  %v5599_v60 = vpop.permute.xlu1 %5598 }
0x17cc   : > { %v5594_v62 = vpop.permute.xlu0 %5593  ;;  %v3178_v63 = vmul.f32 %v5669_v59, %v5663_v42  ;;  %v5601_v0 = vunpack.i.h.bf16 %v5599_v60  ;;  %v5600_v1 = vunpack.i.l.bf16 %v5599_v60  ;;  %v5671_v50 = vpop.eup %5670 }
0x17cd   : > { %v5596_v2 = vunpack.i.h.bf16 %v5594_v62  ;;  %v5595_v3 = vunpack.i.l.bf16 %v5594_v62  ;;  %v3180_v40 = vmul.f32 %v5671_v50, %v5661_v61  ;;  %v4713_v50 = vld [vmem:[%s6657_s14 + $0x78] sm:$0xff] }
0x17ce   : > { %5138 = vmatprep.mubr.msk.f32.mxu0 %vm814_vm1, %v3178_v63  ;;  %v5395_v48 = vpack.c.bf16 %v5601_v0, %v5600_v1  ;;  %v4711_v1 = vld [vmem:[%s6657_s14 + $0x68] sm:$0xff] }
0x17cf   : > { %v5385_v4 = vpack.c.bf16 %v5596_v2, %v5595_v3  ;;  %v4714_v2 = vld [vmem:[%s6657_s14 + $0x80] sm:$0xff] }
0x17d0   : > { %v4710_v3 = vld [vmem:[%s6657_s14 + $0x60] sm:$0xff] }
0x17d1   : > { %5386 = vmatprep.subr.bf16.mxu0 %v5385_v4 }
0x17d2   : > { %5388 = vmatpush3.bf16.msra.mxu0 %v5385_v4  ;;  %v5410_v4 = vpack.c.bf16 %v4714_v2, %v4711_v1 }
0x17d3   : > { %v5673_v47 = vpop.eup %5672  ;;  %5396 = vmatprep.subr.bf16.mxu0 %v5395_v48 }
0x17d4   : > { %v5675_v55 = vpop.eup %5674  ;;  %v3382_v5 = vmul.f32 %v5673_v47, %v5667_v46  ;;  %v4715_v47 = vld [vmem:[%s6657_s14 + $0x88] sm:$0xff]  ;;  %5411 = vmatprep.subr.bf16.mxu1 %v5410_v4 }
0x17d5   : > { %5139 = vmatmul.mubr.msk.f32.vlgmr.msra.gmra.mrb[18].mxu0 %vm814_vm1, %v3180_v40  ;;  %v3384_v52 = vmul.f32 %v5675_v55, %v5665_v45  ;;  %v5412_v40 = vpack.c.bf16 %v4713_v50, %v4710_v3 }
0x17d6   : > { %5398 = vmatpush3.bf16.msra.mxu0 %v5395_v48  ;;  %5152 = vmatprep.mubr.msk.f32.mxu0 %vm814_vm1, %v3382_v5  ;;  %v4712_v48 = vld [vmem:[%s6657_s14 + $0x70] sm:$0xff]  ;;  %v4717_v5 = vld [vmem:[%s6657_s14 + $0x98] sm:$0xff] }
0x17d7   : > { %5400 = vmatprep.subr.bf16.mxu0 %v5399_v15  ;;  %v5418_v55 = vpack.c.bf16 %v4715_v47, %v4712_v48  ;;  %5413 = vmatpush1.bf16.msra.mxu1 %v5412_v40 }
0x17d9   : > { %5153 = vmatmul.mubr.msk.f32.vlgmr.msra.gmra.mrb[20].mxu0 %vm814_vm1, %v3384_v52  ;;  %v4720_v52 = vld [vmem:[%s6657_s14 + $0xb0] sm:$0xff] }
0x17da   : > { %5402 = vmatpush3.bf16.msra.mxu0 %v5399_v15  ;;  %v5414_v11 = vpack.c.bf16 %v4720_v52, %v4717_v5  ;;  %v4719_v15 = vld [vmem:[%s6657_s14 + $0xa8] sm:$0xff] }
0x17db   : > { %5404 = vmatprep.subr.bf16.mxu0 %v5403_v20 }
0x17dc   : > { %5415 = vmatprep.subr.bf16.mxu1 %v5414_v11 }
0x17fe   : > { %v3709_v53 = vpop.f32.mrb[24].mxu1 }
0x17ff   : > { %v5175_v54 = vpop.f32.mrb[25].mxu1 }
0x1800   : > { %v4737_v54 = vld [vmem:[%s6659_s16 + $0x48] sm:$0xff] }
0x18a8   : > { %v5140_v24 = vpop.f32.mrb[18].mxu0 }
0x18a9   : > { %v3259_v25 = vpop.f32.mrb[19].mxu0 }
0x18ac   : > { %v5154_v14 = vpop.f32.mrb[20].mxu0 }
0x18ad   : > { %v3463_v26 = vpop.f32.mrb[21].mxu0 }
0x18ae   : > { %5159 = vmatprep.mubr.msk.f32.mxu0 %vm814_vm1, %v3463_v26 }
0x18af   : > { %5160 = vmatmul.mubr.msk.f32.vlgmr.msra.gmra.mrb[22].mxu0 %vm814_vm1, %v5154_v14 }
0x18b0   : > { %5166 = vmatprep.mubr.msk.f32.mxu0 %vm814_vm1, %v3259_v25  ;;  %5406 = vmatpush3.bf16.msra.mxu0 %v5403_v20  ;;  %v5422_v25 = vpack.c.bf16 %v4721_v18, %v4718_v17  ;;  %v5684_v18 = vld [vmem:[%s6164_s25] sm:$0x1] }
0x18b1   : > { %5419 = vmatprep.subr.bf16.mxu0 %v5418_v55 }
0x18b7   : > { %5167 = vmatmul.mubr.msk.f32.vlgmr.msra.gmra.mrb[22].mxu0 %vm814_vm1, %v5140_v24  ;;  %v5416_v24 = vpack.c.bf16 %v4719_v15, %v4716_v8  ;;  %v4749_v15 = vld [vmem:[%s6661_s18 + $0x18] sm:$0xff] }
0x18b8   : > { %5421 = vmatpush3.bf16.msra.mxu0 %v5418_v55 }
0x18b9   : > { %5423 = vmatprep.subr.bf16.mxu0 %v5422_v25  ;;  %5417 = vmatpush1.bf16.msra.mxu1 %v5416_v24 }
0x18bc   : > { %5425 = vmatpush3.bf16.msra.mxu0 %v5422_v25 }
0x198a   : > { %v5168_v30 = vpop.f32.mrb[22].mxu0 }
0x198b   : > { %v3637_v31 = vadd.f32 %v5168_v30, %v6367_v6  ;;  %v3625_v33 = vpop.f32.mrb[23].mxu0 }
0x198c   : > { %v3636_v35 = vadd.f32 %v3625_v33, %v6363_v51  ;;  %v4708_v51 = vld [vmem:[%s6656_s13 + $0x1] sm:$0x1] }
0x198d   : > { %v3716_v36 = vsel %vm724_vm0, %v3637_v31, 0.0  ;;  %v3710_v49 = vadd.f32 %v4708_v51, %v3709_v53 }
0x198e   : > { %3717 = vadd.xlane.f32.xlu0 %v3716_v36  ;;  %v3713_v37 = vsel %vm724_vm0, %v3636_v35, 0.0 }
0x198f   : > { %3714 = vadd.xlane.f32.xlu1 %v3713_v37  ;;  %v3742_v56 = vrot.slane %v3710_v49, %v6096_v58 }
0x1a1b   : > { %v3718_v41 = vpop.xlane.xlu0 %3717 }
0x1a1c   : > { %v3720_v61 = vmul.f32 0.03125, %v3718_v41  ;;  %v3715_v42 = vpop.xlane.xlu1 %3714 }
0x1a1d   : > { %v3719_v43 = vmul.f32 0.03125, %v3715_v42 }
0x1a1e   : > { %v3722_v44 = vsub.f32 %v3637_v31, %v3720_v61 }
0x1a1f   : > { %v3721_v34 = vsub.f32 %v3636_v35, %v3719_v43 }
0x1a20   : > { %v3724_v45 = vmul.f32 %v3722_v44, %v3722_v44 }
0x1a21   : > { %v3723_v46 = vmul.f32 %v3721_v34, %v3721_v34 }
0x1a22   : > { %v3728_v7 = vsel %vm724_vm0, %v3724_v45, 0.0 }
0x1a23   : > { %3729 = vadd.xlane.f32.xlu1 %v3728_v7  ;;  %v3725_v6 = vsel %vm724_vm0, %v3723_v46, 0.0 }
0x1a24   : > { %3726 = vadd.xlane.f32.xlu0 %v3725_v6 }
0x1a34   : > { %3754 = vrot.lane.b32.xlu1 %v3742_v56, %s6714_s0 }
0x1ab0   : > { %v3730_v57 = vpop.xlane.xlu1 %3729 }
0x1ab1   : > { %v3732_v59 = vmul.f32 0.032258064, %v3730_v57  ;;  %v3727_v60 = vpop.xlane.xlu0 %3726 }
0x1ab2   : > { %v3731_v62 = vmul.f32 0.032258064, %v3727_v60 }
0x1ab3   : > { %v3734_v63 = vadd.f32 1e-06, %v3732_v59  ;;  %v4739_v59 = vld [vmem:[%s6659_s16 + $0x58] sm:$0xff] }
0x1ab4   : > { %v3733_v0 = vadd.f32 1e-06, %v3731_v62  ;;  %v3755_v27 = vpop.permute.xlu1 %3754 }
0x1ab5   : > { %5676 = vrsqrt.f32 %v3734_v63 }
0x1ab6   : > { %5678 = vrsqrt.f32 %v3733_v0 }
0x1abf   : > { %v5677_v20 = vpop.eup %5676 }
0x1ac0   : > { %v5679_v14 = vpop.eup %5678  ;;  %v3738_v26 = vmul.f32 %v5677_v20, %v3722_v44  ;;  %v4745_v20 = vld [vmem:[%s6660_s17 + $0x1] ss:$0 sm:$0xff] }
0x1ac1   : > { %v3737_v10 = vmul.f32 %v5679_v14, %v3721_v34 }
0x1ac2   : > { %3747 = vrot.lane.b32.xlu1 %v3738_v26, %s6714_s0 }
0x1ac3   : > { %3745 = vrot.lane.b32.xlu0 %v3737_v10, %s6714_s0 }
0x1b34   : > { %v3748_v29 = vpop.permute.xlu1 %3747 }
0x1b35   : > { %v3752_v30 = vmul.f32 %v3748_v29, %v3742_v56  ;;  %v3746_v31 = vpop.permute.xlu0 %3745 }
0x1b36   : > { %v3751_v33 = vmul.f32 %v3746_v31, %v3742_v56  ;;  %v4738_v56 = vld [vmem:[%s6659_s16 + $0x50] sm:$0xff] }
0x1b37   : > { %v3758_v35 = vadd.f32 %v3755_v27, %v3752_v30  ;;  %v5446_v60 = vpack.c.bf16 %v4739_v59, %v4738_v56 }
0x1b38   : > { %v3757_v36 = vadd.f32 %v3755_v27, %v3751_v33 }
0x1b39   : > { %v3760_v37 = vsel %vm1429_vm2, 0.0, %v3758_v35 }
0x1b3a   : > { %3780 = vrot.lane.b32.xlu1 %v3760_v37, %s6701_s30  ;;  %v3759_v41 = vsel %vm1428_vm3, 0.0, %v3757_v36 }
0x1b3b   : > { %3778 = vrot.lane.b32.xlu0 %v3759_v41, %s6701_s30 }
0x1bac   : > { %v6500_v42 = vpop.permute.xlu1 %3780 }
0x1bad   : > { %v6498_v61 = vpop.permute.xlu0 %3778 }
0x1bae   : > { %4723 = vmatmul.mubr.msk.f32.vlgmr.msra.gmra.mrb[26].mxu1 %vm724_vm0, %v6498_v61  ;;  %5184 = vmatprep.mubr.msk.f32.mxu0 %vm724_vm0, %v6498_v61 }
0x1baf   : > { %5185 = vmatmul.mubr.msk.f32.vlgmr.msra.gmra.mrb[24].mxu0 %vm724_vm0, %v6500_v42  ;;  %3856 = vmatprep.mubr.f32.mxu1 %v5749_v12 }
0x1bb0   : > { %5191 = vmatprep.mubr.msk.f32.mxu0 %vm814_vm1, %v5952_v13  ;;  %v4736_v13 = vld [vmem:[%s6659_s16 + $0x40] sm:$0xff] }
0x1bb1   : > { %v5442_v57 = vpack.c.bf16 %v4737_v54, %v4736_v13 }
0x1bb2   : > { %4724 = vmatmul.mubr.msk.f32.gmra.mrb[28].mxu1 %vm724_vm0, %v6500_v42 }
0x1bb3   : > { %5443 = vmatprep.subr.bf16.mxu1 %v5442_v57 }
0x1bb4   : > { %5445 = vmatpush3.bf16.msra.mxu1 %v5442_v57 }
0x1bb5   : > { %5447 = vmatprep.subr.bf16.mxu1 %v5446_v60 }
0x1bb8   : > { %5449 = vmatpush3.bf16.msra.mxu1 %v5446_v60 }
0x1c81   : > { %v3852_v43 = vpop.f32.mrb[26].mxu1 }
0x1c82   : > { %v3854_v44 = vpop.f32.mrb[27].mxu1  ;;  %v5186_v34 = vpop.f32.mrb[24].mxu0 }
0x1c83   : > { %v3929_v45 = vpop.f32.mrb[25].mxu0 }
0x1c84   : > { %v5438_v46 = vpack.c.bf16 %v5186_v34, %v3929_v45 }
0x1c85   : > { %v3858_v7 = vpop.f32.mrb[28].mxu1 }
0x1c86   : > { %v5602_v6 = vpack.i.bf16 %v3858_v7, %v3852_v43  ;;  %v5430_v51 = vpack.c.bf16 %v3858_v7, %v3852_v43  ;;  %v3860_v53 = vpop.f32.mrb[29].mxu1 }
0x1c87   : > { %v5607_v49 = vpack.i.bf16 %v3860_v53, %v3854_v44 }
0x1c88   : > { %5603 = vrot.lane.b32.xlu0 %v5602_v6, %s6702_s23 }
0x1c89   : > { %5608 = vrot.lane.b32.xlu1 %v5607_v49, %s6702_s23  ;;  %v4750_v49 = vld [vmem:[%s6662_s19 + $0x1] sm:$0x1] }
0x1cfa   : > { %v5604_v62 = vpop.permute.xlu0 %5603 }
0x1cfb   : > { %v5606_v63 = vunpack.i.h.bf16 %v5604_v62  ;;  %v5605_v0 = vunpack.i.l.bf16 %v5604_v62  ;;  %v5609_v1 = vpop.permute.xlu1 %5608 }
0x1cfc   : > { %v5611_v3 = vunpack.i.h.bf16 %v5609_v1  ;;  %v5610_v4 = vunpack.i.l.bf16 %v5609_v1 }
0x1cfd   : > { %v5426_v2 = vpack.c.bf16 %v5606_v63, %v5605_v0 }
0x1cfe   : > { %v5434_v50 = vpack.c.bf16 %v5611_v3, %v5610_v4 }
0x1cff   : > { %5427 = vmatprep.subr.bf16.mxu0 %v5426_v2 }
0x1d00   : > { %5429 = vmatpush3.bf16.msra.mxu0 %v5426_v2 }
0x1d01   : > { %5431 = vmatprep.subr.bf16.mxu0 %v5430_v51 }
0x1d03   : > { %5192 = vmatmul.mubr.msk.f32.vlgmr.msra.gmra.mrb[26].mxu0 %vm814_vm1, %v5966_v21  ;;  %v4740_v21 = vld [vmem:[%s6659_s16 + $0x60] sm:$0xff] }
0x1d04   : > { %5433 = vmatpush3.bf16.msra.mxu0 %v5430_v51  ;;  %5198 = vmatprep.mubr.msk.f32.mxu0 %vm814_vm1, %v6268_v16  ;;  %v4741_v16 = vld [vmem:[%s6659_s16 + $0x68] sm:$0xff] }
0x1d05   : > { %5435 = vmatprep.subr.bf16.mxu0 %v5434_v50 }
0x1d0b   : > { %5199 = vmatmul.mubr.msk.f32.vlgmr.msra.gmra.mrb[26].mxu0 %vm814_vm1, %v6277_v19  ;;  %v4743_v19 = vld [vmem:[%s6659_s16 + $0x78] sm:$0xff] }
0x1d0c   : > { %5437 = vmatpush3.bf16.msra.mxu0 %v5434_v50  ;;  %5205 = vmatprep.mubr.msk.f32.mxu0 %vm814_vm1, %v5969_v22  ;;  %v5450_v22 = vpack.c.bf16 %v4741_v16, %v4740_v21 }
0x1d0d   : > { %5439 = vmatprep.subr.bf16.mxu0 %v5438_v46 }
0x1d0e   : > { %5451 = vmatprep.subr.bf16.mxu1 %v5450_v22 }
0x1d0f   : > { %5453 = vmatpush3.bf16.msra.mxu1 %v5450_v22 }
0x1d13   : > { %5206 = vmatmul.mubr.msk.f32.vlgmr.msra.gmra.mrb[26].mxu0 %vm814_vm1, %v5979_v28  ;;  %v4742_v28 = vld [vmem:[%s6659_s16 + $0x70] sm:$0xff] }
0x1d14   : > { %5441 = vmatpush3.bf16.msra.mxu0 %v5438_v46  ;;  %5212 = vmatprep.mubr.msk.f32.mxu0 %vm814_vm1, %v6286_v23  ;;  %v5454_v23 = vpack.c.bf16 %v4743_v19, %v4742_v28 }
0x1d16   : > { %5455 = vmatprep.subr.bf16.mxu1 %v5454_v23 }
0x1d17   : > { %5457 = vmatpush3.bf16.msra.mxu1 %v5454_v23 }
0x1d18   : > { %5458 = vmatprep.subr.bf16.mxu1 %v5756_v32  ;;  %v4748_v32 = vld [vmem:[%s6661_s18 + $0x10] sm:$0xff] }
0x1d19   : > { %v5459_v17 = vpack.c.bf16 %v4749_v15, %v4748_v32 }
0x1d1b   : > { %5213 = vmatmul.mubr.msk.f32.vlgmr.msra.gmra.mrb[26].mxu0 %vm814_vm1, %v6295_v9  ;;  %v4735_v9 = vld [vmem:[%s6658_s15 + $0x1] ss:$0 sm:$0xff] }
0x1dee   : > { %v5214_v48 = vpop.f32.mrb[26].mxu0 }
0x1def   : > { %v5467_v47 = vadd.f32 %v5214_v48, %v3860_v53  ;;  %v4249_v40 = vpop.f32.mrb[27].mxu0 }
0x1df0   : > { %v5468_v55 = vadd.f32 %v4249_v40, %v3854_v44 }
0x1df1   : > { %v4267_v5 = vadd.f32 %v5467_v47, %v4735_v9 }
0x1df2   : > { %v4266_v52 = vadd.f32 %v5468_v55, %v4735_v9 }
0x1df3   : > { %v4269_v11 = vmax.f32 %v4267_v5, 0.0 }
0x1df4   : > { %v4268_v8 = vmax.f32 %v4266_v52, 0.0 }
0x1df6   : > { %5231 = vmatprep.mubr.msk.f32.mxu1 %vm2764_vm12, %v4268_v8 }
0x1df7   : > { %5232 = vmatmul.mubr.msk.f32.vlgmr.msra.gmra.mrb[30].mxu1 %vm2764_vm12, %v4269_v11 }
0x1df8   : > { %5238 = vmatprep.mubr.msk.f32.mxu1 %vm5757_vm7, %v5749_v12  ;;  %5460 = vmatpush3.bf16.msra.mxu1 %v5459_v17 }
0x1dfb   : > { %5239 = vmatmul.mubr.msk.f32.vlgmr.msra.gmra.mrb[32].mxu1 %vm814_vm1, %v5684_v18 }
0x1eca   : > { %v5233_v24 = vpop.f32.mrb[30].mxu1 }
0x1ecb   : > { %v4365_v25 = vadd.f32 %v5233_v24, %v4745_v20  ;;  %v4359_v12 = vpop.f32.mrb[31].mxu1 }
0x1ecc   : > { %v4360_v14 = vadd.f32 %v4745_v20, %v4359_v12 }
0x1ecd   : > { %v4371_v26 = vadd.f32 %v4365_v25, %v6500_v42 }
0x1ece   : > { %v4370_v10 = vadd.f32 %v4360_v14, %v6498_v61  ;;  %v4443_v61 = vpop.f32.mrb[32].mxu1 }
0x1ecf   : > { %v4450_v27 = vsel %vm724_vm0, %v4371_v26, 0.0  ;;  %v5240_v34 = vpop.f32.mrb[33].mxu1  ;;  %v4444_v13 = vadd.f32 %v4750_v49, %v4443_v61 }
0x1ed0   : > { %4451 = vadd.xlane.f32.xlu1 %v4450_v27  ;;  %v4447_v29 = vsel %vm724_vm0, %v4370_v10, 0.0 }
0x1ed1   : > { %4448 = vadd.xlane.f32.xlu0 %v4447_v29  ;;  %v4476_v57 = vrot.slane %v4444_v13, %v6096_v58 }
0x1f5d   : > { %v4452_v30 = vpop.xlane.xlu1 %4451 }
0x1f5e   : > { %v4454_v31 = vmul.f32 0.03125, %v4452_v30  ;;  %v4449_v33 = vpop.xlane.xlu0 %4448 }
0x1f5f   : > { %v4453_v35 = vmul.f32 0.03125, %v4449_v33 }
0x1f60   : > { %v4456_v36 = vsub.f32 %v4371_v26, %v4454_v31 }
0x1f61   : > { %v4455_v37 = vsub.f32 %v4370_v10, %v4453_v35 }
0x1f62   : > { %v4458_v44 = vmul.f32 %v4456_v36, %v4456_v36 }
0x1f63   : > { %v4457_v41 = vmul.f32 %v4455_v37, %v4455_v37 }
0x1f64   : > { %v4462_v42 = vsel %vm724_vm0, %v4458_v44, 0.0 }
0x1f65   : > { %v4459_v43 = vsel %vm724_vm0, %v4457_v41, 0.0 }
0x1f66   : > { %4460 = vadd.xlane.f32.xlu0 %v4459_v43 }
0x1f6a   : > { %4463 = vadd.xlane.f32.xlu0 %v4462_v42 }
0x1ff3   : > { %v4461_v45 = vpop.xlane.xlu0 %4460 }
0x1ff4   : > { %v4465_v46 = vmul.f32 0.032258064, %v4461_v45 }
0x1ff6   : > { %v4467_v7 = vadd.f32 1e-06, %v4465_v46 }
0x1ff7   : > { %v4464_v6 = vpop.xlane.xlu0 %4463 }
0x1ff8   : > { %5680 = vrsqrt.f32 %v4467_v7  ;;  %v4466_v51 = vmul.f32 0.032258064, %v4464_v6 }
0x1ffa   : > { %v4468_v53 = vadd.f32 1e-06, %v4466_v51 }
0x1ffc   : > { %5682 = vrsqrt.f32 %v4468_v53 }
0x2002   : > { %v5681_v54 = vpop.eup %5680 }
0x2003   : > { %v4471_v56 = vmul.f32 %v5681_v54, %v4455_v37 }
0x2005   : > { %4479 = vrot.lane.b32.xlu1 %v4471_v56, %s6714_s0 }
0x2006   : > { %v5683_v59 = vpop.eup %5682 }
0x2007   : > { %v4472_v60 = vmul.f32 %v5683_v59, %v4456_v36 }
0x2009   : > { %4488 = vrot.lane.b32.xlu1 %v4476_v57, %s6714_s0  ;;  %4481 = vrot.lane.b32.xlu0 %v4472_v60, %s6714_s0  ;;  %s657_s0 = sand.u32 1, %s5739_s22  }
0x200a   : > { %s4615_s8 = sshll.u32 %s657_s0, 4 }
0x200b   : > { %s659_s21 = scalar_lea.vmem [#allocation2], %s4615_s8 }
0x200c   : > { %s4519_s29 = sshll.u32 %s659_s21, 4  ;;  %s6593_s29 = int_to_ptr.vmem [resolvable:$true] %s4519_s29 }
0x200d   : > { %s5685_s23 = scalar_lea.vmem %s6593_s29, 256  ;;  %p5692_p0 = scmp.lt.s32.totalorder %s6593_s29, %s5690_s6 }
0x200e   : > { %p5686_p11 = scmp.ne.s32.totalorder %s6593_s29, %s5685_s23  ;;  %p5693_p1 = scmp.lt.s32.totalorder %s5691_s7, %s5685_s23 }
0x2010   : > { %p5687_p12 = pnand %p5686_p11, %p5905_p5  ;;  %p5694_p2 = por %p5693_p1, %p5692_p0 }
0x2012   : > { %p5688_p13 = pneg %p5687_p12 }
0x2014   : > { %p5695_p3 = pnand %p5694_p2, %p5688_p13 }
0x2077   : > { %v4480_v62 = vpop.permute.xlu1 %4479 }
0x2078   : > { %v4485_v63 = vmul.f32 %v4480_v62, %v4476_v57 }
0x207b   : > { %v4489_v0 = vpop.permute.xlu1 %4488  ;;  %v4482_v1 = vpop.permute.xlu0 %4481 }
0x207c   : > { %v4491_v2 = vadd.f32 %v4489_v0, %v4485_v63  ;;  %v4486_v3 = vmul.f32 %v4482_v1, %v4476_v57 }
0x207e   : > { %v4492_v4 = vadd.f32 %v4489_v0, %v4486_v3  ;;  %v4493_v58 = vsel %vm1428_vm3, 0.0, %v4491_v2 }
0x207f   : > { %4497 = vrot.lane.b32.xlu1 %v4493_v58, %s6701_s30 }
0x2080   : > { %v4494_v50 = vsel %vm1429_vm2, 0.0, %v4492_v4 }
0x2081   : > { %4499 = vrot.lane.b32.xlu0 %v4494_v50, %s6701_s30  ;;  %s6602_s30 = scalar_lea.sflag [#allocation3], %s657_s0 }
0x20f1   : > { %v4498_v21 = vpop.permute.xlu1 %4497 }
0x20f2   : > { %4503 = vst.msk [vmem:[%s659_s21] sm:$0xff] %vm724_vm0, %v4498_v21 }
0x20f3   : > { %v4500_v38 = vpop.permute.xlu0 %4499 }
0x20f4   : > { %4504 = vst.msk [vmem:[%s659_s21 + $0x8] sm:$0xff] %vm724_vm0, %v4500_v38 }
0x20f5   : > { %5698 = shalt.err (!%p5695_p3)
}
0x20f6   : > { %s5699_s27 = scalar_lea.hbm %s6598_s9, 256  ;;  %s5703_s0 = scalar_lea.hbm %s6663_s20, 512 }
0x20f7   : > { %p5700_p4 = scmp.ne.s32.totalorder %s6598_s9, %s5699_s27  ;;  %p5704_p9 = scmp.lt.u32.totalorder %s6598_s9, %s6663_s20 }
0x20f8   : > { %p5705_p10 = scmp.lt.u32.totalorder %s5703_s0, %s5699_s27  ;;  %p5707_p12 = scmp.lt.u32.totalorder %s5699_s27, %s6598_s9 }
0x20f9   : > { %p5701_p7 = pnand %p5700_p4, %p5905_p5 }
0x20fa   : > { %p5706_p11 = por %p5705_p10, %p5704_p9 }
0x20fb   : > { %p5702_p8 = pneg %p5701_p7 }
0x20fc   : > { %p5708_p13 = por %p5707_p12, %p5706_p11 }
0x20fe   : > { %p5709_p0 = pnand %p5708_p13, %p5702_p8 }
0x2100   : > { %5712 = shalt.err (!%p5709_p0)
}
0x2101   : > { %s5760_s26 = smov 128   ;;  %s5761_s3 = smov 8  }
0x2102   : > { %5489 = dma.vmem_to_hbm [thread:$0]  (%p5905_p5), %s6593_s29, 256, %s6598_s9, %s6602_s30, %s5760_s26, %s5760_s26, %s5761_s3  }
0x2103 PF: > { %p5495_p1 = scmp.ge.s32.totalorder %s5747_s24, 2  ;;  %s4534_s23 = sand.u32 1, %s5735_s1  }
0x2104   : > { %s4535_s2 = scalar_lea.sflag [#allocation3], %s4534_s23 }
0x2105   : > { %p5492_p2 = pnand %p5495_p1, %p5909_p6 }
0x2107   : > { %5730 = dma.done.wait (!%p5492_p2), %s4535_s2, 256  }
0x2108   : > { %5732 = vsyncadd (!%p5492_p2), %s4535_s2, 4294967040  ;;  %s6719_s24 = sld [smem:[#allocation6_spill]]  ;;  %s6720_s6 = sld [smem:[#allocation5_spill]] }
0x2109   : > { %s6721_s23 = sld [smem:[#allocation7_spill]]  ;;  %s6722_s1 = smov %s5739_s22 }
0x210e   : > { %p30_p3 = scmp.ge.s32.totalorder %s6719_s24, 4   ;;  %s6723_s22 = smov %s6720_s6 }
0x2110   :  { %32 = sbr.rel (!%p30_p3) target bundleno = 14 (0xe), region = 154 }
0x2117   :  { %4540 = vsyncpa [#allocation3], 1 }
0x2118   :  { %4542 = vsyncpa [#allocation3 + $0x1], 1 }

</bundles_post_ra>
